<compile_context>
chip_gen: v5e
topology: v5e:2x2
jax: 0.10.0
libtpu: 0.0.40
codegen_flags: <defaults>
</compile_context>

<pallas_src>
import jax
import jax.numpy as jnp
from jax import lax
from jax.experimental import pallas as pl
from jax.experimental.pallas import tpu as pltpu

# Small, self-consistent shapes implied by the module (scaled down):
B = 2            # real batch
B_PAD = 8        # padded batch = sublane height
L_SRC = 8        # source (char) sequence length
L_TGT = 8        # target (word) sequence length
CHAR_VOCAB = 20
CHAR_EMB = 8     # char embedding dim (encoder input size)
H_ENC = 16       # encoder LSTM hidden size
P = L_SRC * H_ENC            # Hopfield pattern dim = flattened binarized encoder feats (=128)
WORD_VOCAB = 32
V_PAD = 128      # lane-dense padded vocab
WORD_EMB = 100   # word embedding dim (as in the module)
E_PAD = 128      # lane-dense padded word embedding dim
D_DEC = 16       # decoder_dim (as in the module)
PAD_ID = 2       # '<pad>' id in the dictionary
THETA = 0.0      # Hopfield retrieve threshold

# --- packed-slab row offsets (all multiples of 8) ---------------------------------
# slab_lstm : (184, 64)
ENC_WIH_R0, ENC_WHH_R0, ENC_B_R0 = 0, 8, 24
DEC_WIH_R0, DEC_WHH_R0, DEC_B_R0 = 32, 160, 176
LSTM_ROWS = 184
# slab_hpf : (168, 128)
HPF_R0, HEAD_W2_R0, HEAD_B2_R0 = 0, 128, 160
HPF_ROWS = 168
# slab_fc : (192, 32)
WH_R0, WC_R0, WR_R0, FCB_R0, HEAD_W1_R0, HEAD_B1_R0 = 0, 16, 32, 160, 168, 184
FC_ROWS = 192

_VMEM = pl.BlockSpec(memory_space=pltpu.MemorySpace.VMEM)


# ---------------------------------------------------------------------------
# Fused forward kernel
# ---------------------------------------------------------------------------
def _fused_kernel(src_x_ref, tgt_x_ref, lstm_ref, hpf_ref, fc_ref, out_ref):
    H, D = H_ENC, D_DEC

    # ---------------- encoder LSTM + fused Hopfield retrieve ----------------
    enc_wih = lstm_ref[ENC_WIH_R0:ENC_WIH_R0 + CHAR_EMB, :]      # (8, 64)
    enc_whh = lstm_ref[ENC_WHH_R0:ENC_WHH_R0 + H, :]             # (16, 64)
    enc_b = lstm_ref[ENC_B_R0:ENC_B_R0 + 1, :]                   # (1, 64)

    # hoisted bulk input projection: one MXU push for the whole sequence
    xp = jnp.dot(src_x_ref[...], enc_wih,
                 preferred_element_type=jnp.float32) + enc_b     # (L_SRC*8, 64)

    h = jnp.zeros((B_PAD, H), jnp.float32)
    c = jnp.zeros((B_PAD, H), jnp.float32)
    ret = jnp.zeros((B_PAD, P), jnp.float32)
    for t in range(L_SRC):                     # static unroll, aligned 8-row slices
        r0 = t * B_PAD
        z = xp[r0:r0 + B_PAD, :] + jnp.dot(h, enc_whh,
                                           preferred_element_type=jnp.float32)  # (8, 64)
        i_t = jax.nn.sigmoid(z[:, 0:H])
        f_t = jax.nn.sigmoid(z[:, H:2 * H])
        g_t = jnp.tanh(z[:, 2 * H:3 * H])
        o_t = jax.nn.sigmoid(z[:, 3 * H:4 * H])
        c = f_t * c + i_t * g_t
        h = o_t * jnp.tanh(c)
        s_t = jnp.where(h > 0.0, 1.0, -1.0)    # binarized encoder feature for step t
        # distributed Hopfield retrieve: partial (8,16)x(16,128) hides under recurrence
        ret = ret + jnp.dot(s_t, hpf_ref[HPF_R0 + t * H:HPF_R0 + (t + 1) * H, :],
                            preferred_element_type=jnp.float32)
    ret = jnp.where(ret > THETA, 1.0, -1.0)    # (8, 128)

    # ---------------- fc_h / fc_c -> decoder initial state ------------------
    # [h0_dec | c0_dec] in one 32-lane result via block-diagonal / concatenated weights
    hc0 = (jnp.dot(h, fc_ref[WH_R0:WH_R0 + H, :], preferred_element_type=jnp.float32)
           + jnp.dot(c, fc_ref[WC_R0:WC_R0 + H, :], preferred_element_type=jnp.float32)
           + jnp.dot(ret, fc_ref[WR_R0:WR_R0 + P, :], preferred_element_type=jnp.float32)
           + fc_ref[FCB_R0:FCB_R0 + 1, :])                       # (8, 32)
    h_d = hc0[:, :D]
    c_d = hc0[:, D:2 * D]

    # ---------------- decoder LSTM with per-step head MLP -------------------
    dec_wih = lstm_ref[DEC_WIH_R0:DEC_WIH_R0 + E_PAD, :]         # (128, 64)
    dec_whh = lstm_ref[DEC_WHH_R0:DEC_WHH_R0 + D, :]             # (16, 64)
    dec_b = lstm_ref[DEC_B_R0:DEC_B_R0 + 1, :]                   # (1, 64)
    head_w1 = fc_ref[HEAD_W1_R0:HEAD_W1_R0 + D, :]               # (16, 32)
    head_b1 = fc_ref[HEAD_B1_R0:HEAD_B1_R0 + 1, :]               # (1, 32)
    head_w2 = hpf_ref[HEAD_W2_R0:HEAD_W2_R0 + 2 * D, :]          # (32, 128)
    head_b2 = hpf_ref[HEAD_B2_R0:HEAD_B2_R0 + 1, :]              # (1, 128)

    xp_d = jnp.dot(tgt_x_ref[...], dec_wih,
                   preferred_element_type=jnp.float32) + dec_b   # (L_TGT*8, 64)

    for t in range(L_TGT):                     # static unroll, aligned 8-row slices
        r0 = t * B_PAD
        z = xp_d[r0:r0 + B_PAD, :] + jnp.dot(h_d, dec_whh,
                                             preferred_element_type=jnp.float32)  # (8, 64)
        i_t = jax.nn.sigmoid(z[:, 0:D])
        f_t = jax.nn.sigmoid(z[:, D:2 * D])
        g_t = jnp.tanh(z[:, 2 * D:3 * D])
        o_t = jax.nn.sigmoid(z[:, 3 * D:4 * D])
        c_d = f_t * c_d + i_t * g_t
        h_d = o_t * jnp.tanh(c_d)
        # head MLP: Linear(D,2D) -> ReLU -> Linear(2D, V_PAD); lane-dense 8x128 store
        hid = jnp.maximum(jnp.dot(h_d, head_w1,
                                  preferred_element_type=jnp.float32) + head_b1, 0.0)
        out_ref[r0:r0 + B_PAD, :] = (
            jnp.dot(hid, head_w2, preferred_element_type=jnp.float32) + head_b2)


# ---------------------------------------------------------------------------
# Wrapper: weight re-layout (one-time XLA ops), embedding gathers, pallas_call
# ---------------------------------------------------------------------------
def _pad_rows(x, rows):
    return jnp.pad(x, ((0, rows - x.shape[0]), (0, 0)))


def _prepare_weights(params):
    f32 = jnp.float32
    H, D = H_ENC, D_DEC

    # -------- slab_lstm (184, 64): fused-gate LSTM weights, pre-transposed --------
    enc_wih = params["enc_w_ih"].T.astype(f32)                              # (8, 64)
    enc_whh = params["enc_w_hh"].T.astype(f32)                              # (16, 64)
    enc_b = (params["enc_b_ih"] + params["enc_b_hh"]).reshape(1, 4 * H).astype(f32)
    dec_wih = jnp.pad(params["dec_w_ih"].T.astype(f32),
                      ((0, E_PAD - WORD_EMB), (0, 0)))                      # (128, 64)
    dec_whh = params["dec_w_hh"].T.astype(f32)                              # (16, 64)
    dec_b = (params["dec_b_ih"] + params["dec_b_hh"]).reshape(1, 4 * D).astype(f32)
    slab_lstm = jnp.concatenate([
        enc_wih, enc_whh, _pad_rows(enc_b, 8),
        dec_wih, dec_whh, _pad_rows(dec_b, 8)], axis=0)                     # (184, 64)

    # -------- slab_hpf (168, 128): Hopfield matrix + head second linear -----------
    hpf_T = params["hpf_weight"].T.astype(f32)                              # (128, 128)
    head_w2 = jnp.pad(params["head_w2"].T.astype(f32),
                      ((0, 0), (0, V_PAD - WORD_VOCAB)))                    # (32, 128)
    head_b2 = jnp.pad(params["head_b2"].reshape(1, -1).astype(f32),
                      ((0, 0), (0, V_PAD - WORD_VOCAB)))                    # (1, 128)
    slab_hpf = jnp.concatenate([hpf_T, head_w2, _pad_rows(head_b2, 8)], axis=0)

    # -------- slab_fc (192, 32): fc_h/fc_c (block-diag / concat) + head first linear
    fch_wh = params["fc_h_w"][:, :H].T.astype(f32)                          # (16, 16)
    fcc_wh = params["fc_c_w"][:, :H].T.astype(f32)                          # (16, 16)
    fch_wr = params["fc_h_w"][:, H:].T.astype(f32)                          # (128, 16)
    fcc_wr = params["fc_c_w"][:, H:].T.astype(f32)                          # (128, 16)
    zeroHD = jnp.zeros((H, D), f32)
    wh_blk = jnp.concatenate([fch_wh, zeroHD], axis=1)                      # (16, 32)
    wc_blk = jnp.concatenate([zeroHD, fcc_wh], axis=1)                      # (16, 32)
    wr_cat = jnp.concatenate([fch_wr, fcc_wr], axis=1)                      # (128, 32)
    b_cat = jnp.concatenate([params["fc_h_b"], params["fc_c_b"]]
                            ).reshape(1, 2 * D).astype(f32)                 # (1, 32)
    head_w1 = params["head_w1"].T.astype(f32)                               # (16, 32)
    head_b1 = params["head_b1"].reshape(1, -1).astype(f32)                  # (1, 32)
    slab_fc = jnp.concatenate([
        wh_blk, wc_blk, wr_cat, _pad_rows(b_cat, 8),
        head_w1, _pad_rows(head_b1, 8)], axis=0)                            # (192, 32)

    return slab_lstm, slab_hpf, slab_fc


@jax.jit
def seq2seq_with_hp_forward(params, source, target_input):
    Bn = source.shape[0]
    assert Bn <= B_PAD
    slab_lstm, slab_hpf, slab_fc = _prepare_weights(params)

    # pad batch to the sublane height (8), then embedding gathers + time-major flatten
    src_ids = jnp.pad(source, ((0, B_PAD - Bn), (0, 0)))
    tgt_ids = jnp.pad(target_input, ((0, B_PAD - Bn), (0, 0)))
    src_x = jnp.transpose(params["char_emb"][src_ids],
                          (1, 0, 2)).reshape(L_SRC * B_PAD, CHAR_EMB)
    tgt_x = jnp.transpose(params["word_emb"][tgt_ids],
                          (1, 0, 2)).reshape(L_TGT * B_PAD, WORD_EMB)
    tgt_x = jnp.pad(tgt_x, ((0, 0), (0, E_PAD - WORD_EMB)))                 # (64, 128)

    out_flat = pl.pallas_call(
        _fused_kernel,
        out_shape=jax.ShapeDtypeStruct((L_TGT * B_PAD, V_PAD), jnp.float32),
        in_specs=[_VMEM] * 5,
        out_specs=_VMEM,
    )(src_x, tgt_x, slab_lstm, slab_hpf, slab_fc)

    logits = out_flat.reshape(L_TGT, B_PAD, V_PAD)[:, :Bn, :WORD_VOCAB]
    return jnp.transpose(logits, (1, 0, 2))                                 # (B, L_tgt, V)


# ---------------------------------------------------------------------------
# Pure-JAX reference (for correctness check)
# ---------------------------------------------------------------------------
def _lstm_ref(x_bm, w_ih, w_hh, b_ih, b_hh, h0, c0):
    H = h0.shape[-1]

    def step(carry, x_t):
        h, c = carry
        z = x_t @ w_ih.T + h @ w_hh.T + b_ih + b_hh
        i = jax.nn.sigmoid(z[:, :H]); f = jax.nn.sigmoid(z[:, H:2 * H])
        g = jnp.tanh(z[:, 2 * H:3 * H]); o = jax.nn.sigmoid(z[:, 3 * H:])
        c = f * c + i * g
        h = o * jnp.tanh(c)
        return (h, c), h

    (hT, cT), hs = lax.scan(step, (h0, c0), jnp.transpose(x_bm, (1, 0, 2)))
    return jnp.transpose(hs, (1, 0, 2)), hT, cT


def reference_forward(params, source, target_input):
    Bn = source.shape[0]
    src_emb = params["char_emb"][source]
    h0 = jnp.zeros((Bn, H_ENC), jnp.float32)
    c0 = jnp.zeros((Bn, H_ENC), jnp.float32)
    feats, h_t, c_t = _lstm_ref(src_emb, params["enc_w_ih"], params["enc_w_hh"],
                                params["enc_b_ih"], params["enc_b_hh"], h0, c0)
    feats = jnp.where(feats > 0.0, 1.0, -1.0)
    feat_flat = feats.reshape(Bn, -1)
    retrieved = feat_flat @ params["hpf_weight"].T
    retrieved = jnp.where(retrieved > THETA, 1.0, -1.0)
    cat_h = jnp.concatenate([h_t, retrieved], axis=-1)
    cat_c = jnp.concatenate([c_t, retrieved], axis=-1)
    h0_dec = cat_h @ params["fc_h_w"].T + params["fc_h_b"]
    c0_dec = cat_c @ params["fc_c_w"].T + params["fc_c_b"]
    tgt_emb = params["word_emb"][target_input]
    dec_feat, _, _ = _lstm_ref(tgt_emb, params["dec_w_ih"], params["dec_w_hh"],
                               params["dec_b_ih"], params["dec_b_hh"], h0_dec, c0_dec)
    hid = jnp.maximum(dec_feat @ params["head_w1"].T + params["head_b1"], 0.0)
    return hid @ params["head_w2"].T + params["head_b2"]


# ---------------------------------------------------------------------------
# Deterministic parameter init (synthetic; GloVe / weight.pt loads are replaced)
# ---------------------------------------------------------------------------
def init_params(key):
    ks = jax.random.split(key, 20)
    n = lambda k, shape, s=0.1: (s * jax.random.normal(k, shape)).astype(jnp.float32)
    word_emb = n(ks[1], (WORD_VOCAB, WORD_EMB))
    word_emb = word_emb.at[PAD_ID].set(0.0)   # padding_idx row zeroed, as nn.Embedding does
    return {
        "char_emb": n(ks[0], (CHAR_VOCAB, CHAR_EMB)),
        "word_emb": word_emb,
        "enc_w_ih": n(ks[2], (4 * H_ENC, CHAR_EMB)),
        "enc_w_hh": n(ks[3], (4 * H_ENC, H_ENC)),
        "enc_b_ih": n(ks[4], (4 * H_ENC,)),
        "enc_b_hh": n(ks[5], (4 * H_ENC,)),
        # TODO(synk): hpf_weight / s_mean come from torch.load('./weight.pt'); synthetic here.
        "hpf_weight": n(ks[6], (P, P), s=0.2),
        "fc_h_w": n(ks[7], (D_DEC, H_ENC + P)),
        "fc_h_b": n(ks[8], (D_DEC,)),
        "fc_c_w": n(ks[9], (D_DEC, H_ENC + P)),
        "fc_c_b": n(ks[10], (D_DEC,)),
        "dec_w_ih": n(ks[11], (4 * D_DEC, WORD_EMB)),
        "dec_w_hh": n(ks[12], (4 * D_DEC, D_DEC)),
        "dec_b_ih": n(ks[13], (4 * D_DEC,)),
        "dec_b_hh": n(ks[14], (4 * D_DEC,)),
        "head_w1": n(ks[15], (2 * D_DEC, D_DEC)),
        "head_b1": n(ks[16], (2 * D_DEC,)),
        "head_w2": n(ks[17], (WORD_VOCAB, 2 * D_DEC)),
        "head_b2": n(ks[18], (WORD_VOCAB,)),
    }


if __name__ == "__main__":
    key = jax.random.PRNGKey(0)
    kp, ks, kt = jax.random.split(key, 3)
    params = init_params(kp)
    source = jax.random.randint(ks, (B, L_SRC), 0, CHAR_VOCAB, dtype=jnp.int32)
    target_input = jax.random.randint(kt, (B, L_TGT), 0, WORD_VOCAB, dtype=jnp.int32)

    out = seq2seq_with_hp_forward(params, source, target_input)
    out = jax.block_until_ready(out)

    assert out.shape == (B, L_TGT, WORD_VOCAB), out.shape
    assert bool(jnp.all(jnp.isfinite(out)))

    # Reference in full-f32 matmul precision.  The +/-1 sign thresholds are
    # discontinuous, so summation-order differences can (very rarely) flip a sign;
    # require >= 99% of elements to match within tolerance.
    with jax.default_matmul_precision("highest"):
        ref = reference_forward(params, source, target_input)
    close = jnp.isclose(out, ref, rtol=1e-2, atol=1e-2)
    frac = float(jnp.mean(close.astype(jnp.float32)))
    assert frac >= 0.99, (frac, float(jnp.max(jnp.abs(out - ref))))

    print("KERNEL_OK")
</pallas_src>

<mosaic_0001>
module attributes {stable_mosaic.version = 11 : i64} {
  func.func @_fused_kernel(%arg0: memref<64x8xf32, #tpu.memory_space<vmem>>, %arg1: memref<64x128xf32, #tpu.memory_space<vmem>>, %arg2: memref<184x64xf32, #tpu.memory_space<vmem>>, %arg3: memref<168x128xf32, #tpu.memory_space<vmem>>, %arg4: memref<192x32xf32, #tpu.memory_space<vmem>>, %arg5: memref<64x128xf32, #tpu.memory_space<vmem>>) attributes {dimension_semantics = [], scalar_prefetch = 0 : i64, scratch_operands = 0 : i64, tpu.core_type = #tpu.core_type<tc>} {
    %c0 = arith.constant 0 : index
    %c0_0 = arith.constant 0 : index
    %0 = vector.load %arg2[%c0, %c0_0] : memref<184x64xf32, #tpu.memory_space<vmem>>, vector<8x64xf32>
    %c8 = arith.constant 8 : index
    %c0_1 = arith.constant 0 : index
    %1 = vector.load %arg2[%c8, %c0_1] : memref<184x64xf32, #tpu.memory_space<vmem>>, vector<16x64xf32>
    %c24 = arith.constant 24 : index
    %c0_2 = arith.constant 0 : index
    %2 = vector.load %arg2[%c24, %c0_2] : memref<184x64xf32, #tpu.memory_space<vmem>>, vector<1x64xf32>
    %c0_3 = arith.constant 0 : index
    %c0_4 = arith.constant 0 : index
    %3 = vector.load %arg0[%c0_3, %c0_4] : memref<64x8xf32, #tpu.memory_space<vmem>>, vector<64x8xf32>
    %cst = arith.constant dense<0.000000e+00> : vector<64x64xf32>
    %4 = tpu.matmul %3, %0, %cst {dimension_numbers = #tpu.dot_dimension_numbers<[1], [0], [0], [1], [0, 0, 1, 1], [], []>} : vector<64x8xf32>, vector<8x64xf32>, vector<64x64xf32> -> vector<64x64xf32>
    %5 = vector.broadcast %2 : vector<1x64xf32> to vector<64x64xf32>
    %6 = arith.addf %4, %5 : vector<64x64xf32>
    %cst_5 = arith.constant 0.000000e+00 : f32
    %7 = vector.broadcast %cst_5 : f32 to vector<8x16xf32>
    %cst_6 = arith.constant 0.000000e+00 : f32
    %8 = vector.broadcast %cst_6 : f32 to vector<8x16xf32>
    %cst_7 = arith.constant 0.000000e+00 : f32
    %9 = vector.broadcast %cst_7 : f32 to vector<8x128xf32>
    %10 = vector.extract_strided_slice %6 {offsets = [0, 0], sizes = [8, 64], strides = [1, 1]} : vector<64x64xf32> to vector<8x64xf32>
    %cst_8 = arith.constant dense<0.000000e+00> : vector<8x64xf32>
    %11 = tpu.matmul %7, %1, %cst_8 {dimension_numbers = #tpu.dot_dimension_numbers<[1], [0], [0], [1], [0, 0, 1, 1], [], []>} : vector<8x16xf32>, vector<16x64xf32>, vector<8x64xf32> -> vector<8x64xf32>
    %12 = arith.addf %10, %11 : vector<8x64xf32>
    %13 = vector.extract_strided_slice %12 {offsets = [0, 0], sizes = [8, 16], strides = [1, 1]} : vector<8x64xf32> to vector<8x16xf32>
    %14 = arith.negf %13 : vector<8x16xf32>
    %15 = math.exp %14 : vector<8x16xf32>
    %cst_9 = arith.constant 1.000000e+00 : f32
    %16 = vector.broadcast %cst_9 : f32 to vector<8x16xf32>
    %17 = arith.addf %16, %15 : vector<8x16xf32>
    %18 = arith.divf %16, %17 : vector<8x16xf32>
    %19 = vector.extract_strided_slice %12 {offsets = [0, 16], sizes = [8, 16], strides = [1, 1]} : vector<8x64xf32> to vector<8x16xf32>
    %20 = arith.negf %19 : vector<8x16xf32>
    %21 = math.exp %20 : vector<8x16xf32>
    %cst_10 = arith.constant 1.000000e+00 : f32
    %22 = vector.broadcast %cst_10 : f32 to vector<8x16xf32>
    %23 = arith.addf %22, %21 : vector<8x16xf32>
    %24 = arith.divf %22, %23 : vector<8x16xf32>
    %25 = vector.extract_strided_slice %12 {offsets = [0, 32], sizes = [8, 16], strides = [1, 1]} : vector<8x64xf32> to vector<8x16xf32>
    %26 = math.tanh %25 : vector<8x16xf32>
    %27 = vector.extract_strided_slice %12 {offsets = [0, 48], sizes = [8, 16], strides = [1, 1]} : vector<8x64xf32> to vector<8x16xf32>
    %28 = arith.negf %27 : vector<8x16xf32>
    %29 = math.exp %28 : vector<8x16xf32>
    %cst_11 = arith.constant 1.000000e+00 : f32
    %30 = vector.broadcast %cst_11 : f32 to vector<8x16xf32>
    %31 = arith.addf %30, %29 : vector<8x16xf32>
    %32 = arith.divf %30, %31 : vector<8x16xf32>
    %33 = arith.mulf %24, %8 : vector<8x16xf32>
    %34 = arith.mulf %18, %26 : vector<8x16xf32>
    %35 = arith.addf %33, %34 : vector<8x16xf32>
    %36 = math.tanh %35 : vector<8x16xf32>
    %37 = arith.mulf %32, %36 : vector<8x16xf32>
    %cst_12 = arith.constant 0.000000e+00 : f32
    %38 = vector.broadcast %cst_12 : f32 to vector<8x16xf32>
    %39 = arith.cmpf ogt, %37, %38 : vector<8x16xf32>
    %cst_13 = arith.constant 1.000000e+00 : f32
    %cst_14 = arith.constant -1.000000e+00 : f32
    %40 = vector.broadcast %cst_13 : f32 to vector<8x16xf32>
    %41 = vector.broadcast %cst_14 : f32 to vector<8x16xf32>
    %42 = arith.select %39, %40, %41 : vector<8x16xi1>, vector<8x16xf32>
    %c0_15 = arith.constant 0 : index
    %c0_16 = arith.constant 0 : index
    %43 = vector.load %arg3[%c0_15, %c0_16] : memref<168x128xf32, #tpu.memory_space<vmem>>, vector<16x128xf32>
    %cst_17 = arith.constant dense<0.000000e+00> : vector<8x128xf32>
    %44 = tpu.matmul %42, %43, %cst_17 {dimension_numbers = #tpu.dot_dimension_numbers<[1], [0], [0], [1], [0, 0, 1, 1], [], []>} : vector<8x16xf32>, vector<16x128xf32>, vector<8x128xf32> -> vector<8x128xf32>
    %45 = arith.addf %9, %44 : vector<8x128xf32>
    %46 = vector.extract_strided_slice %6 {offsets = [8, 0], sizes = [8, 64], strides = [1, 1]} : vector<64x64xf32> to vector<8x64xf32>
    %cst_18 = arith.constant dense<0.000000e+00> : vector<8x64xf32>
    %47 = tpu.matmul %37, %1, %cst_18 {dimension_numbers = #tpu.dot_dimension_numbers<[1], [0], [0], [1], [0, 0, 1, 1], [], []>} : vector<8x16xf32>, vector<16x64xf32>, vector<8x64xf32> -> vector<8x64xf32>
    %48 = arith.addf %46, %47 : vector<8x64xf32>
    %49 = vector.extract_strided_slice %48 {offsets = [0, 0], sizes = [8, 16], strides = [1, 1]} : vector<8x64xf32> to vector<8x16xf32>
    %50 = arith.negf %49 : vector<8x16xf32>
    %51 = math.exp %50 : vector<8x16xf32>
    %cst_19 = arith.constant 1.000000e+00 : f32
    %52 = vector.broadcast %cst_19 : f32 to vector<8x16xf32>
    %53 = arith.addf %52, %51 : vector<8x16xf32>
    %54 = arith.divf %52, %53 : vector<8x16xf32>
    %55 = vector.extract_strided_slice %48 {offsets = [0, 16], sizes = [8, 16], strides = [1, 1]} : vector<8x64xf32> to vector<8x16xf32>
    %56 = arith.negf %55 : vector<8x16xf32>
    %57 = math.exp %56 : vector<8x16xf32>
    %cst_20 = arith.constant 1.000000e+00 : f32
    %58 = vector.broadcast %cst_20 : f32 to vector<8x16xf32>
    %59 = arith.addf %58, %57 : vector<8x16xf32>
    %60 = arith.divf %58, %59 : vector<8x16xf32>
    %61 = vector.extract_strided_slice %48 {offsets = [0, 32], sizes = [8, 16], strides = [1, 1]} : vector<8x64xf32> to vector<8x16xf32>
    %62 = math.tanh %61 : vector<8x16xf32>
    %63 = vector.extract_strided_slice %48 {offsets = [0, 48], sizes = [8, 16], strides = [1, 1]} : vector<8x64xf32> to vector<8x16xf32>
    %64 = arith.negf %63 : vector<8x16xf32>
    %65 = math.exp %64 : vector<8x16xf32>
    %cst_21 = arith.constant 1.000000e+00 : f32
    %66 = vector.broadcast %cst_21 : f32 to vector<8x16xf32>
    %67 = arith.addf %66, %65 : vector<8x16xf32>
    %68 = arith.divf %66, %67 : vector<8x16xf32>
    %69 = arith.mulf %60, %35 : vector<8x16xf32>
    %70 = arith.mulf %54, %62 : vector<8x16xf32>
    %71 = arith.addf %69, %70 : vector<8x16xf32>
    %72 = math.tanh %71 : vector<8x16xf32>
    %73 = arith.mulf %68, %72 : vector<8x16xf32>
    %cst_22 = arith.constant 0.000000e+00 : f32
    %74 = vector.broadcast %cst_22 : f32 to vector<8x16xf32>
    %75 = arith.cmpf ogt, %73, %74 : vector<8x16xf32>
    %cst_23 = arith.constant 1.000000e+00 : f32
    %cst_24 = arith.constant -1.000000e+00 : f32
    %76 = vector.broadcast %cst_23 : f32 to vector<8x16xf32>
    %77 = vector.broadcast %cst_24 : f32 to vector<8x16xf32>
    %78 = arith.select %75, %76, %77 : vector<8x16xi1>, vector<8x16xf32>
    %c16 = arith.constant 16 : index
    %c0_25 = arith.constant 0 : index
    %79 = vector.load %arg3[%c16, %c0_25] : memref<168x128xf32, #tpu.memory_space<vmem>>, vector<16x128xf32>
    %cst_26 = arith.constant dense<0.000000e+00> : vector<8x128xf32>
    %80 = tpu.matmul %78, %79, %cst_26 {dimension_numbers = #tpu.dot_dimension_numbers<[1], [0], [0], [1], [0, 0, 1, 1], [], []>} : vector<8x16xf32>, vector<16x128xf32>, vector<8x128xf32> -> vector<8x128xf32>
    %81 = arith.addf %45, %80 : vector<8x128xf32>
    %82 = vector.extract_strided_slice %6 {offsets = [16, 0], sizes = [8, 64], strides = [1, 1]} : vector<64x64xf32> to vector<8x64xf32>
    %cst_27 = arith.constant dense<0.000000e+00> : vector<8x64xf32>
    %83 = tpu.matmul %73, %1, %cst_27 {dimension_numbers = #tpu.dot_dimension_numbers<[1], [0], [0], [1], [0, 0, 1, 1], [], []>} : vector<8x16xf32>, vector<16x64xf32>, vector<8x64xf32> -> vector<8x64xf32>
    %84 = arith.addf %82, %83 : vector<8x64xf32>
    %85 = vector.extract_strided_slice %84 {offsets = [0, 0], sizes = [8, 16], strides = [1, 1]} : vector<8x64xf32> to vector<8x16xf32>
    %86 = arith.negf %85 : vector<8x16xf32>
    %87 = math.exp %86 : vector<8x16xf32>
    %cst_28 = arith.constant 1.000000e+00 : f32
    %88 = vector.broadcast %cst_28 : f32 to vector<8x16xf32>
    %89 = arith.addf %88, %87 : vector<8x16xf32>
    %90 = arith.divf %88, %89 : vector<8x16xf32>
    %91 = vector.extract_strided_slice %84 {offsets = [0, 16], sizes = [8, 16], strides = [1, 1]} : vector<8x64xf32> to vector<8x16xf32>
    %92 = arith.negf %91 : vector<8x16xf32>
    %93 = math.exp %92 : vector<8x16xf32>
    %cst_29 = arith.constant 1.000000e+00 : f32
    %94 = vector.broadcast %cst_29 : f32 to vector<8x16xf32>
    %95 = arith.addf %94, %93 : vector<8x16xf32>
    %96 = arith.divf %94, %95 : vector<8x16xf32>
    %97 = vector.extract_strided_slice %84 {offsets = [0, 32], sizes = [8, 16], strides = [1, 1]} : vector<8x64xf32> to vector<8x16xf32>
    %98 = math.tanh %97 : vector<8x16xf32>
    %99 = vector.extract_strided_slice %84 {offsets = [0, 48], sizes = [8, 16], strides = [1, 1]} : vector<8x64xf32> to vector<8x16xf32>
    %100 = arith.negf %99 : vector<8x16xf32>
    %101 = math.exp %100 : vector<8x16xf32>
    %cst_30 = arith.constant 1.000000e+00 : f32
    %102 = vector.broadcast %cst_30 : f32 to vector<8x16xf32>
    %103 = arith.addf %102, %101 : vector<8x16xf32>
    %104 = arith.divf %102, %103 : vector<8x16xf32>
    %105 = arith.mulf %96, %71 : vector<8x16xf32>
    %106 = arith.mulf %90, %98 : vector<8x16xf32>
    %107 = arith.addf %105, %106 : vector<8x16xf32>
    %108 = math.tanh %107 : vector<8x16xf32>
    %109 = arith.mulf %104, %108 : vector<8x16xf32>
    %cst_31 = arith.constant 0.000000e+00 : f32
    %110 = vector.broadcast %cst_31 : f32 to vector<8x16xf32>
    %111 = arith.cmpf ogt, %109, %110 : vector<8x16xf32>
    %cst_32 = arith.constant 1.000000e+00 : f32
    %cst_33 = arith.constant -1.000000e+00 : f32
    %112 = vector.broadcast %cst_32 : f32 to vector<8x16xf32>
    %113 = vector.broadcast %cst_33 : f32 to vector<8x16xf32>
    %114 = arith.select %111, %112, %113 : vector<8x16xi1>, vector<8x16xf32>
    %c32 = arith.constant 32 : index
    %c0_34 = arith.constant 0 : index
    %115 = vector.load %arg3[%c32, %c0_34] : memref<168x128xf32, #tpu.memory_space<vmem>>, vector<16x128xf32>
    %cst_35 = arith.constant dense<0.000000e+00> : vector<8x128xf32>
    %116 = tpu.matmul %114, %115, %cst_35 {dimension_numbers = #tpu.dot_dimension_numbers<[1], [0], [0], [1], [0, 0, 1, 1], [], []>} : vector<8x16xf32>, vector<16x128xf32>, vector<8x128xf32> -> vector<8x128xf32>
    %117 = arith.addf %81, %116 : vector<8x128xf32>
    %118 = vector.extract_strided_slice %6 {offsets = [24, 0], sizes = [8, 64], strides = [1, 1]} : vector<64x64xf32> to vector<8x64xf32>
    %cst_36 = arith.constant dense<0.000000e+00> : vector<8x64xf32>
    %119 = tpu.matmul %109, %1, %cst_36 {dimension_numbers = #tpu.dot_dimension_numbers<[1], [0], [0], [1], [0, 0, 1, 1], [], []>} : vector<8x16xf32>, vector<16x64xf32>, vector<8x64xf32> -> vector<8x64xf32>
    %120 = arith.addf %118, %119 : vector<8x64xf32>
    %121 = vector.extract_strided_slice %120 {offsets = [0, 0], sizes = [8, 16], strides = [1, 1]} : vector<8x64xf32> to vector<8x16xf32>
    %122 = arith.negf %121 : vector<8x16xf32>
    %123 = math.exp %122 : vector<8x16xf32>
    %cst_37 = arith.constant 1.000000e+00 : f32
    %124 = vector.broadcast %cst_37 : f32 to vector<8x16xf32>
    %125 = arith.addf %124, %123 : vector<8x16xf32>
    %126 = arith.divf %124, %125 : vector<8x16xf32>
    %127 = vector.extract_strided_slice %120 {offsets = [0, 16], sizes = [8, 16], strides = [1, 1]} : vector<8x64xf32> to vector<8x16xf32>
    %128 = arith.negf %127 : vector<8x16xf32>
    %129 = math.exp %128 : vector<8x16xf32>
    %cst_38 = arith.constant 1.000000e+00 : f32
    %130 = vector.broadcast %cst_38 : f32 to vector<8x16xf32>
    %131 = arith.addf %130, %129 : vector<8x16xf32>
    %132 = arith.divf %130, %131 : vector<8x16xf32>
    %133 = vector.extract_strided_slice %120 {offsets = [0, 32], sizes = [8, 16], strides = [1, 1]} : vector<8x64xf32> to vector<8x16xf32>
    %134 = math.tanh %133 : vector<8x16xf32>
    %135 = vector.extract_strided_slice %120 {offsets = [0, 48], sizes = [8, 16], strides = [1, 1]} : vector<8x64xf32> to vector<8x16xf32>
    %136 = arith.negf %135 : vector<8x16xf32>
    %137 = math.exp %136 : vector<8x16xf32>
    %cst_39 = arith.constant 1.000000e+00 : f32
    %138 = vector.broadcast %cst_39 : f32 to vector<8x16xf32>
    %139 = arith.addf %138, %137 : vector<8x16xf32>
    %140 = arith.divf %138, %139 : vector<8x16xf32>
    %141 = arith.mulf %132, %107 : vector<8x16xf32>
    %142 = arith.mulf %126, %134 : vector<8x16xf32>
    %143 = arith.addf %141, %142 : vector<8x16xf32>
    %144 = math.tanh %143 : vector<8x16xf32>
    %145 = arith.mulf %140, %144 : vector<8x16xf32>
    %cst_40 = arith.constant 0.000000e+00 : f32
    %146 = vector.broadcast %cst_40 : f32 to vector<8x16xf32>
    %147 = arith.cmpf ogt, %145, %146 : vector<8x16xf32>
    %cst_41 = arith.constant 1.000000e+00 : f32
    %cst_42 = arith.constant -1.000000e+00 : f32
    %148 = vector.broadcast %cst_41 : f32 to vector<8x16xf32>
    %149 = vector.broadcast %cst_42 : f32 to vector<8x16xf32>
    %150 = arith.select %147, %148, %149 : vector<8x16xi1>, vector<8x16xf32>
    %c48 = arith.constant 48 : index
    %c0_43 = arith.constant 0 : index
    %151 = vector.load %arg3[%c48, %c0_43] : memref<168x128xf32, #tpu.memory_space<vmem>>, vector<16x128xf32>
    %cst_44 = arith.constant dense<0.000000e+00> : vector<8x128xf32>
    %152 = tpu.matmul %150, %151, %cst_44 {dimension_numbers = #tpu.dot_dimension_numbers<[1], [0], [0], [1], [0, 0, 1, 1], [], []>} : vector<8x16xf32>, vector<16x128xf32>, vector<8x128xf32> -> vector<8x128xf32>
    %153 = arith.addf %117, %152 : vector<8x128xf32>
    %154 = vector.extract_strided_slice %6 {offsets = [32, 0], sizes = [8, 64], strides = [1, 1]} : vector<64x64xf32> to vector<8x64xf32>
    %cst_45 = arith.constant dense<0.000000e+00> : vector<8x64xf32>
    %155 = tpu.matmul %145, %1, %cst_45 {dimension_numbers = #tpu.dot_dimension_numbers<[1], [0], [0], [1], [0, 0, 1, 1], [], []>} : vector<8x16xf32>, vector<16x64xf32>, vector<8x64xf32> -> vector<8x64xf32>
    %156 = arith.addf %154, %155 : vector<8x64xf32>
    %157 = vector.extract_strided_slice %156 {offsets = [0, 0], sizes = [8, 16], strides = [1, 1]} : vector<8x64xf32> to vector<8x16xf32>
    %158 = arith.negf %157 : vector<8x16xf32>
    %159 = math.exp %158 : vector<8x16xf32>
    %cst_46 = arith.constant 1.000000e+00 : f32
    %160 = vector.broadcast %cst_46 : f32 to vector<8x16xf32>
    %161 = arith.addf %160, %159 : vector<8x16xf32>
    %162 = arith.divf %160, %161 : vector<8x16xf32>
    %163 = vector.extract_strided_slice %156 {offsets = [0, 16], sizes = [8, 16], strides = [1, 1]} : vector<8x64xf32> to vector<8x16xf32>
    %164 = arith.negf %163 : vector<8x16xf32>
    %165 = math.exp %164 : vector<8x16xf32>
    %cst_47 = arith.constant 1.000000e+00 : f32
    %166 = vector.broadcast %cst_47 : f32 to vector<8x16xf32>
    %167 = arith.addf %166, %165 : vector<8x16xf32>
    %168 = arith.divf %166, %167 : vector<8x16xf32>
    %169 = vector.extract_strided_slice %156 {offsets = [0, 32], sizes = [8, 16], strides = [1, 1]} : vector<8x64xf32> to vector<8x16xf32>
    %170 = math.tanh %169 : vector<8x16xf32>
    %171 = vector.extract_strided_slice %156 {offsets = [0, 48], sizes = [8, 16], strides = [1, 1]} : vector<8x64xf32> to vector<8x16xf32>
    %172 = arith.negf %171 : vector<8x16xf32>
    %173 = math.exp %172 : vector<8x16xf32>
    %cst_48 = arith.constant 1.000000e+00 : f32
    %174 = vector.broadcast %cst_48 : f32 to vector<8x16xf32>
    %175 = arith.addf %174, %173 : vector<8x16xf32>
    %176 = arith.divf %174, %175 : vector<8x16xf32>
    %177 = arith.mulf %168, %143 : vector<8x16xf32>
    %178 = arith.mulf %162, %170 : vector<8x16xf32>
    %179 = arith.addf %177, %178 : vector<8x16xf32>
    %180 = math.tanh %179 : vector<8x16xf32>
    %181 = arith.mulf %176, %180 : vector<8x16xf32>
    %cst_49 = arith.constant 0.000000e+00 : f32
    %182 = vector.broadcast %cst_49 : f32 to vector<8x16xf32>
    %183 = arith.cmpf ogt, %181, %182 : vector<8x16xf32>
    %cst_50 = arith.constant 1.000000e+00 : f32
    %cst_51 = arith.constant -1.000000e+00 : f32
    %184 = vector.broadcast %cst_50 : f32 to vector<8x16xf32>
    %185 = vector.broadcast %cst_51 : f32 to vector<8x16xf32>
    %186 = arith.select %183, %184, %185 : vector<8x16xi1>, vector<8x16xf32>
    %c64 = arith.constant 64 : index
    %c0_52 = arith.constant 0 : index
    %187 = vector.load %arg3[%c64, %c0_52] : memref<168x128xf32, #tpu.memory_space<vmem>>, vector<16x128xf32>
    %cst_53 = arith.constant dense<0.000000e+00> : vector<8x128xf32>
    %188 = tpu.matmul %186, %187, %cst_53 {dimension_numbers = #tpu.dot_dimension_numbers<[1], [0], [0], [1], [0, 0, 1, 1], [], []>} : vector<8x16xf32>, vector<16x128xf32>, vector<8x128xf32> -> vector<8x128xf32>
    %189 = arith.addf %153, %188 : vector<8x128xf32>
    %190 = vector.extract_strided_slice %6 {offsets = [40, 0], sizes = [8, 64], strides = [1, 1]} : vector<64x64xf32> to vector<8x64xf32>
    %cst_54 = arith.constant dense<0.000000e+00> : vector<8x64xf32>
    %191 = tpu.matmul %181, %1, %cst_54 {dimension_numbers = #tpu.dot_dimension_numbers<[1], [0], [0], [1], [0, 0, 1, 1], [], []>} : vector<8x16xf32>, vector<16x64xf32>, vector<8x64xf32> -> vector<8x64xf32>
    %192 = arith.addf %190, %191 : vector<8x64xf32>
    %193 = vector.extract_strided_slice %192 {offsets = [0, 0], sizes = [8, 16], strides = [1, 1]} : vector<8x64xf32> to vector<8x16xf32>
    %194 = arith.negf %193 : vector<8x16xf32>
    %195 = math.exp %194 : vector<8x16xf32>
    %cst_55 = arith.constant 1.000000e+00 : f32
    %196 = vector.broadcast %cst_55 : f32 to vector<8x16xf32>
    %197 = arith.addf %196, %195 : vector<8x16xf32>
    %198 = arith.divf %196, %197 : vector<8x16xf32>
    %199 = vector.extract_strided_slice %192 {offsets = [0, 16], sizes = [8, 16], strides = [1, 1]} : vector<8x64xf32> to vector<8x16xf32>
    %200 = arith.negf %199 : vector<8x16xf32>
    %201 = math.exp %200 : vector<8x16xf32>
    %cst_56 = arith.constant 1.000000e+00 : f32
    %202 = vector.broadcast %cst_56 : f32 to vector<8x16xf32>
    %203 = arith.addf %202, %201 : vector<8x16xf32>
    %204 = arith.divf %202, %203 : vector<8x16xf32>
    %205 = vector.extract_strided_slice %192 {offsets = [0, 32], sizes = [8, 16], strides = [1, 1]} : vector<8x64xf32> to vector<8x16xf32>
    %206 = math.tanh %205 : vector<8x16xf32>
    %207 = vector.extract_strided_slice %192 {offsets = [0, 48], sizes = [8, 16], strides = [1, 1]} : vector<8x64xf32> to vector<8x16xf32>
    %208 = arith.negf %207 : vector<8x16xf32>
    %209 = math.exp %208 : vector<8x16xf32>
    %cst_57 = arith.constant 1.000000e+00 : f32
    %210 = vector.broadcast %cst_57 : f32 to vector<8x16xf32>
    %211 = arith.addf %210, %209 : vector<8x16xf32>
    %212 = arith.divf %210, %211 : vector<8x16xf32>
    %213 = arith.mulf %204, %179 : vector<8x16xf32>
    %214 = arith.mulf %198, %206 : vector<8x16xf32>
    %215 = arith.addf %213, %214 : vector<8x16xf32>
    %216 = math.tanh %215 : vector<8x16xf32>
    %217 = arith.mulf %212, %216 : vector<8x16xf32>
    %cst_58 = arith.constant 0.000000e+00 : f32
    %218 = vector.broadcast %cst_58 : f32 to vector<8x16xf32>
    %219 = arith.cmpf ogt, %217, %218 : vector<8x16xf32>
    %cst_59 = arith.constant 1.000000e+00 : f32
    %cst_60 = arith.constant -1.000000e+00 : f32
    %220 = vector.broadcast %cst_59 : f32 to vector<8x16xf32>
    %221 = vector.broadcast %cst_60 : f32 to vector<8x16xf32>
    %222 = arith.select %219, %220, %221 : vector<8x16xi1>, vector<8x16xf32>
    %c80 = arith.constant 80 : index
    %c0_61 = arith.constant 0 : index
    %223 = vector.load %arg3[%c80, %c0_61] : memref<168x128xf32, #tpu.memory_space<vmem>>, vector<16x128xf32>
    %cst_62 = arith.constant dense<0.000000e+00> : vector<8x128xf32>
    %224 = tpu.matmul %222, %223, %cst_62 {dimension_numbers = #tpu.dot_dimension_numbers<[1], [0], [0], [1], [0, 0, 1, 1], [], []>} : vector<8x16xf32>, vector<16x128xf32>, vector<8x128xf32> -> vector<8x128xf32>
    %225 = arith.addf %189, %224 : vector<8x128xf32>
    %226 = vector.extract_strided_slice %6 {offsets = [48, 0], sizes = [8, 64], strides = [1, 1]} : vector<64x64xf32> to vector<8x64xf32>
    %cst_63 = arith.constant dense<0.000000e+00> : vector<8x64xf32>
    %227 = tpu.matmul %217, %1, %cst_63 {dimension_numbers = #tpu.dot_dimension_numbers<[1], [0], [0], [1], [0, 0, 1, 1], [], []>} : vector<8x16xf32>, vector<16x64xf32>, vector<8x64xf32> -> vector<8x64xf32>
    %228 = arith.addf %226, %227 : vector<8x64xf32>
    %229 = vector.extract_strided_slice %228 {offsets = [0, 0], sizes = [8, 16], strides = [1, 1]} : vector<8x64xf32> to vector<8x16xf32>
    %230 = arith.negf %229 : vector<8x16xf32>
    %231 = math.exp %230 : vector<8x16xf32>
    %cst_64 = arith.constant 1.000000e+00 : f32
    %232 = vector.broadcast %cst_64 : f32 to vector<8x16xf32>
    %233 = arith.addf %232, %231 : vector<8x16xf32>
    %234 = arith.divf %232, %233 : vector<8x16xf32>
    %235 = vector.extract_strided_slice %228 {offsets = [0, 16], sizes = [8, 16], strides = [1, 1]} : vector<8x64xf32> to vector<8x16xf32>
    %236 = arith.negf %235 : vector<8x16xf32>
    %237 = math.exp %236 : vector<8x16xf32>
    %cst_65 = arith.constant 1.000000e+00 : f32
    %238 = vector.broadcast %cst_65 : f32 to vector<8x16xf32>
    %239 = arith.addf %238, %237 : vector<8x16xf32>
    %240 = arith.divf %238, %239 : vector<8x16xf32>
    %241 = vector.extract_strided_slice %228 {offsets = [0, 32], sizes = [8, 16], strides = [1, 1]} : vector<8x64xf32> to vector<8x16xf32>
    %242 = math.tanh %241 : vector<8x16xf32>
    %243 = vector.extract_strided_slice %228 {offsets = [0, 48], sizes = [8, 16], strides = [1, 1]} : vector<8x64xf32> to vector<8x16xf32>
    %244 = arith.negf %243 : vector<8x16xf32>
    %245 = math.exp %244 : vector<8x16xf32>
    %cst_66 = arith.constant 1.000000e+00 : f32
    %246 = vector.broadcast %cst_66 : f32 to vector<8x16xf32>
    %247 = arith.addf %246, %245 : vector<8x16xf32>
    %248 = arith.divf %246, %247 : vector<8x16xf32>
    %249 = arith.mulf %240, %215 : vector<8x16xf32>
    %250 = arith.mulf %234, %242 : vector<8x16xf32>
    %251 = arith.addf %249, %250 : vector<8x16xf32>
    %252 = math.tanh %251 : vector<8x16xf32>
    %253 = arith.mulf %248, %252 : vector<8x16xf32>
    %cst_67 = arith.constant 0.000000e+00 : f32
    %254 = vector.broadcast %cst_67 : f32 to vector<8x16xf32>
    %255 = arith.cmpf ogt, %253, %254 : vector<8x16xf32>
    %cst_68 = arith.constant 1.000000e+00 : f32
    %cst_69 = arith.constant -1.000000e+00 : f32
    %256 = vector.broadcast %cst_68 : f32 to vector<8x16xf32>
    %257 = vector.broadcast %cst_69 : f32 to vector<8x16xf32>
    %258 = arith.select %255, %256, %257 : vector<8x16xi1>, vector<8x16xf32>
    %c96 = arith.constant 96 : index
    %c0_70 = arith.constant 0 : index
    %259 = vector.load %arg3[%c96, %c0_70] : memref<168x128xf32, #tpu.memory_space<vmem>>, vector<16x128xf32>
    %cst_71 = arith.constant dense<0.000000e+00> : vector<8x128xf32>
    %260 = tpu.matmul %258, %259, %cst_71 {dimension_numbers = #tpu.dot_dimension_numbers<[1], [0], [0], [1], [0, 0, 1, 1], [], []>} : vector<8x16xf32>, vector<16x128xf32>, vector<8x128xf32> -> vector<8x128xf32>
    %261 = arith.addf %225, %260 : vector<8x128xf32>
    %262 = vector.extract_strided_slice %6 {offsets = [56, 0], sizes = [8, 64], strides = [1, 1]} : vector<64x64xf32> to vector<8x64xf32>
    %cst_72 = arith.constant dense<0.000000e+00> : vector<8x64xf32>
    %263 = tpu.matmul %253, %1, %cst_72 {dimension_numbers = #tpu.dot_dimension_numbers<[1], [0], [0], [1], [0, 0, 1, 1], [], []>} : vector<8x16xf32>, vector<16x64xf32>, vector<8x64xf32> -> vector<8x64xf32>
    %264 = arith.addf %262, %263 : vector<8x64xf32>
    %265 = vector.extract_strided_slice %264 {offsets = [0, 0], sizes = [8, 16], strides = [1, 1]} : vector<8x64xf32> to vector<8x16xf32>
    %266 = arith.negf %265 : vector<8x16xf32>
    %267 = math.exp %266 : vector<8x16xf32>
    %cst_73 = arith.constant 1.000000e+00 : f32
    %268 = vector.broadcast %cst_73 : f32 to vector<8x16xf32>
    %269 = arith.addf %268, %267 : vector<8x16xf32>
    %270 = arith.divf %268, %269 : vector<8x16xf32>
    %271 = vector.extract_strided_slice %264 {offsets = [0, 16], sizes = [8, 16], strides = [1, 1]} : vector<8x64xf32> to vector<8x16xf32>
    %272 = arith.negf %271 : vector<8x16xf32>
    %273 = math.exp %272 : vector<8x16xf32>
    %cst_74 = arith.constant 1.000000e+00 : f32
    %274 = vector.broadcast %cst_74 : f32 to vector<8x16xf32>
    %275 = arith.addf %274, %273 : vector<8x16xf32>
    %276 = arith.divf %274, %275 : vector<8x16xf32>
    %277 = vector.extract_strided_slice %264 {offsets = [0, 32], sizes = [8, 16], strides = [1, 1]} : vector<8x64xf32> to vector<8x16xf32>
    %278 = math.tanh %277 : vector<8x16xf32>
    %279 = vector.extract_strided_slice %264 {offsets = [0, 48], sizes = [8, 16], strides = [1, 1]} : vector<8x64xf32> to vector<8x16xf32>
    %280 = arith.negf %279 : vector<8x16xf32>
    %281 = math.exp %280 : vector<8x16xf32>
    %cst_75 = arith.constant 1.000000e+00 : f32
    %282 = vector.broadcast %cst_75 : f32 to vector<8x16xf32>
    %283 = arith.addf %282, %281 : vector<8x16xf32>
    %284 = arith.divf %282, %283 : vector<8x16xf32>
    %285 = arith.mulf %276, %251 : vector<8x16xf32>
    %286 = arith.mulf %270, %278 : vector<8x16xf32>
    %287 = arith.addf %285, %286 : vector<8x16xf32>
    %288 = math.tanh %287 : vector<8x16xf32>
    %289 = arith.mulf %284, %288 : vector<8x16xf32>
    %cst_76 = arith.constant 0.000000e+00 : f32
    %290 = vector.broadcast %cst_76 : f32 to vector<8x16xf32>
    %291 = arith.cmpf ogt, %289, %290 : vector<8x16xf32>
    %cst_77 = arith.constant 1.000000e+00 : f32
    %cst_78 = arith.constant -1.000000e+00 : f32
    %292 = vector.broadcast %cst_77 : f32 to vector<8x16xf32>
    %293 = vector.broadcast %cst_78 : f32 to vector<8x16xf32>
    %294 = arith.select %291, %292, %293 : vector<8x16xi1>, vector<8x16xf32>
    %c112 = arith.constant 112 : index
    %c0_79 = arith.constant 0 : index
    %295 = vector.load %arg3[%c112, %c0_79] : memref<168x128xf32, #tpu.memory_space<vmem>>, vector<16x128xf32>
    %cst_80 = arith.constant dense<0.000000e+00> : vector<8x128xf32>
    %296 = tpu.matmul %294, %295, %cst_80 {dimension_numbers = #tpu.dot_dimension_numbers<[1], [0], [0], [1], [0, 0, 1, 1], [], []>} : vector<8x16xf32>, vector<16x128xf32>, vector<8x128xf32> -> vector<8x128xf32>
    %297 = arith.addf %261, %296 : vector<8x128xf32>
    %cst_81 = arith.constant 0.000000e+00 : f32
    %298 = vector.broadcast %cst_81 : f32 to vector<8x128xf32>
    %299 = arith.cmpf ogt, %297, %298 : vector<8x128xf32>
    %cst_82 = arith.constant 1.000000e+00 : f32
    %cst_83 = arith.constant -1.000000e+00 : f32
    %300 = vector.broadcast %cst_82 : f32 to vector<8x128xf32>
    %301 = vector.broadcast %cst_83 : f32 to vector<8x128xf32>
    %302 = arith.select %299, %300, %301 : vector<8x128xi1>, vector<8x128xf32>
    %c0_84 = arith.constant 0 : index
    %c0_85 = arith.constant 0 : index
    %303 = vector.load %arg4[%c0_84, %c0_85] : memref<192x32xf32, #tpu.memory_space<vmem>>, vector<16x32xf32>
    %cst_86 = arith.constant dense<0.000000e+00> : vector<8x32xf32>
    %304 = tpu.matmul %289, %303, %cst_86 {dimension_numbers = #tpu.dot_dimension_numbers<[1], [0], [0], [1], [0, 0, 1, 1], [], []>} : vector<8x16xf32>, vector<16x32xf32>, vector<8x32xf32> -> vector<8x32xf32>
    %c16_87 = arith.constant 16 : index
    %c0_88 = arith.constant 0 : index
    %305 = vector.load %arg4[%c16_87, %c0_88] : memref<192x32xf32, #tpu.memory_space<vmem>>, vector<16x32xf32>
    %cst_89 = arith.constant dense<0.000000e+00> : vector<8x32xf32>
    %306 = tpu.matmul %287, %305, %cst_89 {dimension_numbers = #tpu.dot_dimension_numbers<[1], [0], [0], [1], [0, 0, 1, 1], [], []>} : vector<8x16xf32>, vector<16x32xf32>, vector<8x32xf32> -> vector<8x32xf32>
    %307 = arith.addf %304, %306 : vector<8x32xf32>
    %c32_90 = arith.constant 32 : index
    %c0_91 = arith.constant 0 : index
    %308 = vector.load %arg4[%c32_90, %c0_91] : memref<192x32xf32, #tpu.memory_space<vmem>>, vector<128x32xf32>
    %cst_92 = arith.constant dense<0.000000e+00> : vector<8x32xf32>
    %309 = tpu.matmul %302, %308, %cst_92 {dimension_numbers = #tpu.dot_dimension_numbers<[1], [0], [0], [1], [0, 0, 1, 1], [], []>} : vector<8x128xf32>, vector<128x32xf32>, vector<8x32xf32> -> vector<8x32xf32>
    %310 = arith.addf %307, %309 : vector<8x32xf32>
    %c160 = arith.constant 160 : index
    %c0_93 = arith.constant 0 : index
    %311 = vector.load %arg4[%c160, %c0_93] : memref<192x32xf32, #tpu.memory_space<vmem>>, vector<1x32xf32>
    %312 = vector.broadcast %311 : vector<1x32xf32> to vector<8x32xf32>
    %313 = arith.addf %310, %312 : vector<8x32xf32>
    %314 = vector.extract_strided_slice %313 {offsets = [0, 0], sizes = [8, 16], strides = [1, 1]} : vector<8x32xf32> to vector<8x16xf32>
    %315 = vector.extract_strided_slice %313 {offsets = [0, 16], sizes = [8, 16], strides = [1, 1]} : vector<8x32xf32> to vector<8x16xf32>
    %c32_94 = arith.constant 32 : index
    %c0_95 = arith.constant 0 : index
    %316 = vector.load %arg2[%c32_94, %c0_95] : memref<184x64xf32, #tpu.memory_space<vmem>>, vector<128x64xf32>
    %c160_96 = arith.constant 160 : index
    %c0_97 = arith.constant 0 : index
    %317 = vector.load %arg2[%c160_96, %c0_97] : memref<184x64xf32, #tpu.memory_space<vmem>>, vector<16x64xf32>
    %c176 = arith.constant 176 : index
    %c0_98 = arith.constant 0 : index
    %318 = vector.load %arg2[%c176, %c0_98] : memref<184x64xf32, #tpu.memory_space<vmem>>, vector<1x64xf32>
    %c168 = arith.constant 168 : index
    %c0_99 = arith.constant 0 : index
    %319 = vector.load %arg4[%c168, %c0_99] : memref<192x32xf32, #tpu.memory_space<vmem>>, vector<16x32xf32>
    %c184 = arith.constant 184 : index
    %c0_100 = arith.constant 0 : index
    %320 = vector.load %arg4[%c184, %c0_100] : memref<192x32xf32, #tpu.memory_space<vmem>>, vector<1x32xf32>
    %c128 = arith.constant 128 : index
    %c0_101 = arith.constant 0 : index
    %321 = vector.load %arg3[%c128, %c0_101] : memref<168x128xf32, #tpu.memory_space<vmem>>, vector<32x128xf32>
    %c160_102 = arith.constant 160 : index
    %c0_103 = arith.constant 0 : index
    %322 = vector.load %arg3[%c160_102, %c0_103] : memref<168x128xf32, #tpu.memory_space<vmem>>, vector<1x128xf32>
    %c0_104 = arith.constant 0 : index
    %c0_105 = arith.constant 0 : index
    %323 = vector.load %arg1[%c0_104, %c0_105] : memref<64x128xf32, #tpu.memory_space<vmem>>, vector<64x128xf32>
    %cst_106 = arith.constant dense<0.000000e+00> : vector<64x64xf32>
    %324 = tpu.matmul %323, %316, %cst_106 {dimension_numbers = #tpu.dot_dimension_numbers<[1], [0], [0], [1], [0, 0, 1, 1], [], []>} : vector<64x128xf32>, vector<128x64xf32>, vector<64x64xf32> -> vector<64x64xf32>
    %325 = vector.broadcast %318 : vector<1x64xf32> to vector<64x64xf32>
    %326 = arith.addf %324, %325 : vector<64x64xf32>
    %327 = vector.extract_strided_slice %326 {offsets = [0, 0], sizes = [8, 64], strides = [1, 1]} : vector<64x64xf32> to vector<8x64xf32>
    %cst_107 = arith.constant dense<0.000000e+00> : vector<8x64xf32>
    %328 = tpu.matmul %314, %317, %cst_107 {dimension_numbers = #tpu.dot_dimension_numbers<[1], [0], [0], [1], [0, 0, 1, 1], [], []>} : vector<8x16xf32>, vector<16x64xf32>, vector<8x64xf32> -> vector<8x64xf32>
    %329 = arith.addf %327, %328 : vector<8x64xf32>
    %330 = vector.extract_strided_slice %329 {offsets = [0, 0], sizes = [8, 16], strides = [1, 1]} : vector<8x64xf32> to vector<8x16xf32>
    %331 = arith.negf %330 : vector<8x16xf32>
    %332 = math.exp %331 : vector<8x16xf32>
    %cst_108 = arith.constant 1.000000e+00 : f32
    %333 = vector.broadcast %cst_108 : f32 to vector<8x16xf32>
    %334 = arith.addf %333, %332 : vector<8x16xf32>
    %335 = arith.divf %333, %334 : vector<8x16xf32>
    %336 = vector.extract_strided_slice %329 {offsets = [0, 16], sizes = [8, 16], strides = [1, 1]} : vector<8x64xf32> to vector<8x16xf32>
    %337 = arith.negf %336 : vector<8x16xf32>
    %338 = math.exp %337 : vector<8x16xf32>
    %cst_109 = arith.constant 1.000000e+00 : f32
    %339 = vector.broadcast %cst_109 : f32 to vector<8x16xf32>
    %340 = arith.addf %339, %338 : vector<8x16xf32>
    %341 = arith.divf %339, %340 : vector<8x16xf32>
    %342 = vector.extract_strided_slice %329 {offsets = [0, 32], sizes = [8, 16], strides = [1, 1]} : vector<8x64xf32> to vector<8x16xf32>
    %343 = math.tanh %342 : vector<8x16xf32>
    %344 = vector.extract_strided_slice %329 {offsets = [0, 48], sizes = [8, 16], strides = [1, 1]} : vector<8x64xf32> to vector<8x16xf32>
    %345 = arith.negf %344 : vector<8x16xf32>
    %346 = math.exp %345 : vector<8x16xf32>
    %cst_110 = arith.constant 1.000000e+00 : f32
    %347 = vector.broadcast %cst_110 : f32 to vector<8x16xf32>
    %348 = arith.addf %347, %346 : vector<8x16xf32>
    %349 = arith.divf %347, %348 : vector<8x16xf32>
    %350 = arith.mulf %341, %315 : vector<8x16xf32>
    %351 = arith.mulf %335, %343 : vector<8x16xf32>
    %352 = arith.addf %350, %351 : vector<8x16xf32>
    %353 = math.tanh %352 : vector<8x16xf32>
    %354 = arith.mulf %349, %353 : vector<8x16xf32>
    %cst_111 = arith.constant dense<0.000000e+00> : vector<8x32xf32>
    %355 = tpu.matmul %354, %319, %cst_111 {dimension_numbers = #tpu.dot_dimension_numbers<[1], [0], [0], [1], [0, 0, 1, 1], [], []>} : vector<8x16xf32>, vector<16x32xf32>, vector<8x32xf32> -> vector<8x32xf32>
    %356 = vector.broadcast %320 : vector<1x32xf32> to vector<8x32xf32>
    %357 = arith.addf %355, %356 : vector<8x32xf32>
    %cst_112 = arith.constant 0.000000e+00 : f32
    %358 = vector.broadcast %cst_112 : f32 to vector<8x32xf32>
    %359 = arith.maximumf %357, %358 : vector<8x32xf32>
    %cst_113 = arith.constant dense<0.000000e+00> : vector<8x128xf32>
    %360 = tpu.matmul %359, %321, %cst_113 {dimension_numbers = #tpu.dot_dimension_numbers<[1], [0], [0], [1], [0, 0, 1, 1], [], []>} : vector<8x32xf32>, vector<32x128xf32>, vector<8x128xf32> -> vector<8x128xf32>
    %361 = vector.broadcast %322 : vector<1x128xf32> to vector<8x128xf32>
    %362 = arith.addf %360, %361 : vector<8x128xf32>
    %c0_114 = arith.constant 0 : index
    %c0_115 = arith.constant 0 : index
    %363 = vector.load %arg5[%c0_114, %c0_115] : memref<64x128xf32, #tpu.memory_space<vmem>>, vector<8x128xf32>
    tpu.vector_store %arg5[%c0_114, %c0_115], %362 {strides = array<i32>} : memref<64x128xf32, #tpu.memory_space<vmem>>, vector<8x128xf32>,
    %364 = vector.extract_strided_slice %326 {offsets = [8, 0], sizes = [8, 64], strides = [1, 1]} : vector<64x64xf32> to vector<8x64xf32>
    %cst_116 = arith.constant dense<0.000000e+00> : vector<8x64xf32>
    %365 = tpu.matmul %354, %317, %cst_116 {dimension_numbers = #tpu.dot_dimension_numbers<[1], [0], [0], [1], [0, 0, 1, 1], [], []>} : vector<8x16xf32>, vector<16x64xf32>, vector<8x64xf32> -> vector<8x64xf32>
    %366 = arith.addf %364, %365 : vector<8x64xf32>
    %367 = vector.extract_strided_slice %366 {offsets = [0, 0], sizes = [8, 16], strides = [1, 1]} : vector<8x64xf32> to vector<8x16xf32>
    %368 = arith.negf %367 : vector<8x16xf32>
    %369 = math.exp %368 : vector<8x16xf32>
    %cst_117 = arith.constant 1.000000e+00 : f32
    %370 = vector.broadcast %cst_117 : f32 to vector<8x16xf32>
    %371 = arith.addf %370, %369 : vector<8x16xf32>
    %372 = arith.divf %370, %371 : vector<8x16xf32>
    %373 = vector.extract_strided_slice %366 {offsets = [0, 16], sizes = [8, 16], strides = [1, 1]} : vector<8x64xf32> to vector<8x16xf32>
    %374 = arith.negf %373 : vector<8x16xf32>
    %375 = math.exp %374 : vector<8x16xf32>
    %cst_118 = arith.constant 1.000000e+00 : f32
    %376 = vector.broadcast %cst_118 : f32 to vector<8x16xf32>
    %377 = arith.addf %376, %375 : vector<8x16xf32>
    %378 = arith.divf %376, %377 : vector<8x16xf32>
    %379 = vector.extract_strided_slice %366 {offsets = [0, 32], sizes = [8, 16], strides = [1, 1]} : vector<8x64xf32> to vector<8x16xf32>
    %380 = math.tanh %379 : vector<8x16xf32>
    %381 = vector.extract_strided_slice %366 {offsets = [0, 48], sizes = [8, 16], strides = [1, 1]} : vector<8x64xf32> to vector<8x16xf32>
    %382 = arith.negf %381 : vector<8x16xf32>
    %383 = math.exp %382 : vector<8x16xf32>
    %cst_119 = arith.constant 1.000000e+00 : f32
    %384 = vector.broadcast %cst_119 : f32 to vector<8x16xf32>
    %385 = arith.addf %384, %383 : vector<8x16xf32>
    %386 = arith.divf %384, %385 : vector<8x16xf32>
    %387 = arith.mulf %378, %352 : vector<8x16xf32>
    %388 = arith.mulf %372, %380 : vector<8x16xf32>
    %389 = arith.addf %387, %388 : vector<8x16xf32>
    %390 = math.tanh %389 : vector<8x16xf32>
    %391 = arith.mulf %386, %390 : vector<8x16xf32>
    %cst_120 = arith.constant dense<0.000000e+00> : vector<8x32xf32>
    %392 = tpu.matmul %391, %319, %cst_120 {dimension_numbers = #tpu.dot_dimension_numbers<[1], [0], [0], [1], [0, 0, 1, 1], [], []>} : vector<8x16xf32>, vector<16x32xf32>, vector<8x32xf32> -> vector<8x32xf32>
    %393 = vector.broadcast %320 : vector<1x32xf32> to vector<8x32xf32>
    %394 = arith.addf %392, %393 : vector<8x32xf32>
    %cst_121 = arith.constant 0.000000e+00 : f32
    %395 = vector.broadcast %cst_121 : f32 to vector<8x32xf32>
    %396 = arith.maximumf %394, %395 : vector<8x32xf32>
    %cst_122 = arith.constant dense<0.000000e+00> : vector<8x128xf32>
    %397 = tpu.matmul %396, %321, %cst_122 {dimension_numbers = #tpu.dot_dimension_numbers<[1], [0], [0], [1], [0, 0, 1, 1], [], []>} : vector<8x32xf32>, vector<32x128xf32>, vector<8x128xf32> -> vector<8x128xf32>
    %398 = vector.broadcast %322 : vector<1x128xf32> to vector<8x128xf32>
    %399 = arith.addf %397, %398 : vector<8x128xf32>
    %c8_123 = arith.constant 8 : index
    %c0_124 = arith.constant 0 : index
    %400 = vector.load %arg5[%c8_123, %c0_124] : memref<64x128xf32, #tpu.memory_space<vmem>>, vector<8x128xf32>
    tpu.vector_store %arg5[%c8_123, %c0_124], %399 {strides = array<i32>} : memref<64x128xf32, #tpu.memory_space<vmem>>, vector<8x128xf32>,
    %401 = vector.extract_strided_slice %326 {offsets = [16, 0], sizes = [8, 64], strides = [1, 1]} : vector<64x64xf32> to vector<8x64xf32>
    %cst_125 = arith.constant dense<0.000000e+00> : vector<8x64xf32>
    %402 = tpu.matmul %391, %317, %cst_125 {dimension_numbers = #tpu.dot_dimension_numbers<[1], [0], [0], [1], [0, 0, 1, 1], [], []>} : vector<8x16xf32>, vector<16x64xf32>, vector<8x64xf32> -> vector<8x64xf32>
    %403 = arith.addf %401, %402 : vector<8x64xf32>
    %404 = vector.extract_strided_slice %403 {offsets = [0, 0], sizes = [8, 16], strides = [1, 1]} : vector<8x64xf32> to vector<8x16xf32>
    %405 = arith.negf %404 : vector<8x16xf32>
    %406 = math.exp %405 : vector<8x16xf32>
    %cst_126 = arith.constant 1.000000e+00 : f32
    %407 = vector.broadcast %cst_126 : f32 to vector<8x16xf32>
    %408 = arith.addf %407, %406 : vector<8x16xf32>
    %409 = arith.divf %407, %408 : vector<8x16xf32>
    %410 = vector.extract_strided_slice %403 {offsets = [0, 16], sizes = [8, 16], strides = [1, 1]} : vector<8x64xf32> to vector<8x16xf32>
    %411 = arith.negf %410 : vector<8x16xf32>
    %412 = math.exp %411 : vector<8x16xf32>
    %cst_127 = arith.constant 1.000000e+00 : f32
    %413 = vector.broadcast %cst_127 : f32 to vector<8x16xf32>
    %414 = arith.addf %413, %412 : vector<8x16xf32>
    %415 = arith.divf %413, %414 : vector<8x16xf32>
    %416 = vector.extract_strided_slice %403 {offsets = [0, 32], sizes = [8, 16], strides = [1, 1]} : vector<8x64xf32> to vector<8x16xf32>
    %417 = math.tanh %416 : vector<8x16xf32>
    %418 = vector.extract_strided_slice %403 {offsets = [0, 48], sizes = [8, 16], strides = [1, 1]} : vector<8x64xf32> to vector<8x16xf32>
    %419 = arith.negf %418 : vector<8x16xf32>
    %420 = math.exp %419 : vector<8x16xf32>
    %cst_128 = arith.constant 1.000000e+00 : f32
    %421 = vector.broadcast %cst_128 : f32 to vector<8x16xf32>
    %422 = arith.addf %421, %420 : vector<8x16xf32>
    %423 = arith.divf %421, %422 : vector<8x16xf32>
    %424 = arith.mulf %415, %389 : vector<8x16xf32>
    %425 = arith.mulf %409, %417 : vector<8x16xf32>
    %426 = arith.addf %424, %425 : vector<8x16xf32>
    %427 = math.tanh %426 : vector<8x16xf32>
    %428 = arith.mulf %423, %427 : vector<8x16xf32>
    %cst_129 = arith.constant dense<0.000000e+00> : vector<8x32xf32>
    %429 = tpu.matmul %428, %319, %cst_129 {dimension_numbers = #tpu.dot_dimension_numbers<[1], [0], [0], [1], [0, 0, 1, 1], [], []>} : vector<8x16xf32>, vector<16x32xf32>, vector<8x32xf32> -> vector<8x32xf32>
    %430 = vector.broadcast %320 : vector<1x32xf32> to vector<8x32xf32>
    %431 = arith.addf %429, %430 : vector<8x32xf32>
    %cst_130 = arith.constant 0.000000e+00 : f32
    %432 = vector.broadcast %cst_130 : f32 to vector<8x32xf32>
    %433 = arith.maximumf %431, %432 : vector<8x32xf32>
    %cst_131 = arith.constant dense<0.000000e+00> : vector<8x128xf32>
    %434 = tpu.matmul %433, %321, %cst_131 {dimension_numbers = #tpu.dot_dimension_numbers<[1], [0], [0], [1], [0, 0, 1, 1], [], []>} : vector<8x32xf32>, vector<32x128xf32>, vector<8x128xf32> -> vector<8x128xf32>
    %435 = vector.broadcast %322 : vector<1x128xf32> to vector<8x128xf32>
    %436 = arith.addf %434, %435 : vector<8x128xf32>
    %c16_132 = arith.constant 16 : index
    %c0_133 = arith.constant 0 : index
    %437 = vector.load %arg5[%c16_132, %c0_133] : memref<64x128xf32, #tpu.memory_space<vmem>>, vector<8x128xf32>
    tpu.vector_store %arg5[%c16_132, %c0_133], %436 {strides = array<i32>} : memref<64x128xf32, #tpu.memory_space<vmem>>, vector<8x128xf32>,
    %438 = vector.extract_strided_slice %326 {offsets = [24, 0], sizes = [8, 64], strides = [1, 1]} : vector<64x64xf32> to vector<8x64xf32>
    %cst_134 = arith.constant dense<0.000000e+00> : vector<8x64xf32>
    %439 = tpu.matmul %428, %317, %cst_134 {dimension_numbers = #tpu.dot_dimension_numbers<[1], [0], [0], [1], [0, 0, 1, 1], [], []>} : vector<8x16xf32>, vector<16x64xf32>, vector<8x64xf32> -> vector<8x64xf32>
    %440 = arith.addf %438, %439 : vector<8x64xf32>
    %441 = vector.extract_strided_slice %440 {offsets = [0, 0], sizes = [8, 16], strides = [1, 1]} : vector<8x64xf32> to vector<8x16xf32>
    %442 = arith.negf %441 : vector<8x16xf32>
    %443 = math.exp %442 : vector<8x16xf32>
    %cst_135 = arith.constant 1.000000e+00 : f32
    %444 = vector.broadcast %cst_135 : f32 to vector<8x16xf32>
    %445 = arith.addf %444, %443 : vector<8x16xf32>
    %446 = arith.divf %444, %445 : vector<8x16xf32>
    %447 = vector.extract_strided_slice %440 {offsets = [0, 16], sizes = [8, 16], strides = [1, 1]} : vector<8x64xf32> to vector<8x16xf32>
    %448 = arith.negf %447 : vector<8x16xf32>
    %449 = math.exp %448 : vector<8x16xf32>
    %cst_136 = arith.constant 1.000000e+00 : f32
    %450 = vector.broadcast %cst_136 : f32 to vector<8x16xf32>
    %451 = arith.addf %450, %449 : vector<8x16xf32>
    %452 = arith.divf %450, %451 : vector<8x16xf32>
    %453 = vector.extract_strided_slice %440 {offsets = [0, 32], sizes = [8, 16], strides = [1, 1]} : vector<8x64xf32> to vector<8x16xf32>
    %454 = math.tanh %453 : vector<8x16xf32>
    %455 = vector.extract_strided_slice %440 {offsets = [0, 48], sizes = [8, 16], strides = [1, 1]} : vector<8x64xf32> to vector<8x16xf32>
    %456 = arith.negf %455 : vector<8x16xf32>
    %457 = math.exp %456 : vector<8x16xf32>
    %cst_137 = arith.constant 1.000000e+00 : f32
    %458 = vector.broadcast %cst_137 : f32 to vector<8x16xf32>
    %459 = arith.addf %458, %457 : vector<8x16xf32>
    %460 = arith.divf %458, %459 : vector<8x16xf32>
    %461 = arith.mulf %452, %426 : vector<8x16xf32>
    %462 = arith.mulf %446, %454 : vector<8x16xf32>
    %463 = arith.addf %461, %462 : vector<8x16xf32>
    %464 = math.tanh %463 : vector<8x16xf32>
    %465 = arith.mulf %460, %464 : vector<8x16xf32>
    %cst_138 = arith.constant dense<0.000000e+00> : vector<8x32xf32>
    %466 = tpu.matmul %465, %319, %cst_138 {dimension_numbers = #tpu.dot_dimension_numbers<[1], [0], [0], [1], [0, 0, 1, 1], [], []>} : vector<8x16xf32>, vector<16x32xf32>, vector<8x32xf32> -> vector<8x32xf32>
    %467 = vector.broadcast %320 : vector<1x32xf32> to vector<8x32xf32>
    %468 = arith.addf %466, %467 : vector<8x32xf32>
    %cst_139 = arith.constant 0.000000e+00 : f32
    %469 = vector.broadcast %cst_139 : f32 to vector<8x32xf32>
    %470 = arith.maximumf %468, %469 : vector<8x32xf32>
    %cst_140 = arith.constant dense<0.000000e+00> : vector<8x128xf32>
    %471 = tpu.matmul %470, %321, %cst_140 {dimension_numbers = #tpu.dot_dimension_numbers<[1], [0], [0], [1], [0, 0, 1, 1], [], []>} : vector<8x32xf32>, vector<32x128xf32>, vector<8x128xf32> -> vector<8x128xf32>
    %472 = vector.broadcast %322 : vector<1x128xf32> to vector<8x128xf32>
    %473 = arith.addf %471, %472 : vector<8x128xf32>
    %c24_141 = arith.constant 24 : index
    %c0_142 = arith.constant 0 : index
    %474 = vector.load %arg5[%c24_141, %c0_142] : memref<64x128xf32, #tpu.memory_space<vmem>>, vector<8x128xf32>
    tpu.vector_store %arg5[%c24_141, %c0_142], %473 {strides = array<i32>} : memref<64x128xf32, #tpu.memory_space<vmem>>, vector<8x128xf32>,
    %475 = vector.extract_strided_slice %326 {offsets = [32, 0], sizes = [8, 64], strides = [1, 1]} : vector<64x64xf32> to vector<8x64xf32>
    %cst_143 = arith.constant dense<0.000000e+00> : vector<8x64xf32>
    %476 = tpu.matmul %465, %317, %cst_143 {dimension_numbers = #tpu.dot_dimension_numbers<[1], [0], [0], [1], [0, 0, 1, 1], [], []>} : vector<8x16xf32>, vector<16x64xf32>, vector<8x64xf32> -> vector<8x64xf32>
    %477 = arith.addf %475, %476 : vector<8x64xf32>
    %478 = vector.extract_strided_slice %477 {offsets = [0, 0], sizes = [8, 16], strides = [1, 1]} : vector<8x64xf32> to vector<8x16xf32>
    %479 = arith.negf %478 : vector<8x16xf32>
    %480 = math.exp %479 : vector<8x16xf32>
    %cst_144 = arith.constant 1.000000e+00 : f32
    %481 = vector.broadcast %cst_144 : f32 to vector<8x16xf32>
    %482 = arith.addf %481, %480 : vector<8x16xf32>
    %483 = arith.divf %481, %482 : vector<8x16xf32>
    %484 = vector.extract_strided_slice %477 {offsets = [0, 16], sizes = [8, 16], strides = [1, 1]} : vector<8x64xf32> to vector<8x16xf32>
    %485 = arith.negf %484 : vector<8x16xf32>
    %486 = math.exp %485 : vector<8x16xf32>
    %cst_145 = arith.constant 1.000000e+00 : f32
    %487 = vector.broadcast %cst_145 : f32 to vector<8x16xf32>
    %488 = arith.addf %487, %486 : vector<8x16xf32>
    %489 = arith.divf %487, %488 : vector<8x16xf32>
    %490 = vector.extract_strided_slice %477 {offsets = [0, 32], sizes = [8, 16], strides = [1, 1]} : vector<8x64xf32> to vector<8x16xf32>
    %491 = math.tanh %490 : vector<8x16xf32>
    %492 = vector.extract_strided_slice %477 {offsets = [0, 48], sizes = [8, 16], strides = [1, 1]} : vector<8x64xf32> to vector<8x16xf32>
    %493 = arith.negf %492 : vector<8x16xf32>
    %494 = math.exp %493 : vector<8x16xf32>
    %cst_146 = arith.constant 1.000000e+00 : f32
    %495 = vector.broadcast %cst_146 : f32 to vector<8x16xf32>
    %496 = arith.addf %495, %494 : vector<8x16xf32>
    %497 = arith.divf %495, %496 : vector<8x16xf32>
    %498 = arith.mulf %489, %463 : vector<8x16xf32>
    %499 = arith.mulf %483, %491 : vector<8x16xf32>
    %500 = arith.addf %498, %499 : vector<8x16xf32>
    %501 = math.tanh %500 : vector<8x16xf32>
    %502 = arith.mulf %497, %501 : vector<8x16xf32>
    %cst_147 = arith.constant dense<0.000000e+00> : vector<8x32xf32>
    %503 = tpu.matmul %502, %319, %cst_147 {dimension_numbers = #tpu.dot_dimension_numbers<[1], [0], [0], [1], [0, 0, 1, 1], [], []>} : vector<8x16xf32>, vector<16x32xf32>, vector<8x32xf32> -> vector<8x32xf32>
    %504 = vector.broadcast %320 : vector<1x32xf32> to vector<8x32xf32>
    %505 = arith.addf %503, %504 : vector<8x32xf32>
    %cst_148 = arith.constant 0.000000e+00 : f32
    %506 = vector.broadcast %cst_148 : f32 to vector<8x32xf32>
    %507 = arith.maximumf %505, %506 : vector<8x32xf32>
    %cst_149 = arith.constant dense<0.000000e+00> : vector<8x128xf32>
    %508 = tpu.matmul %507, %321, %cst_149 {dimension_numbers = #tpu.dot_dimension_numbers<[1], [0], [0], [1], [0, 0, 1, 1], [], []>} : vector<8x32xf32>, vector<32x128xf32>, vector<8x128xf32> -> vector<8x128xf32>
    %509 = vector.broadcast %322 : vector<1x128xf32> to vector<8x128xf32>
    %510 = arith.addf %508, %509 : vector<8x128xf32>
    %c32_150 = arith.constant 32 : index
    %c0_151 = arith.constant 0 : index
    %511 = vector.load %arg5[%c32_150, %c0_151] : memref<64x128xf32, #tpu.memory_space<vmem>>, vector<8x128xf32>
    tpu.vector_store %arg5[%c32_150, %c0_151], %510 {strides = array<i32>} : memref<64x128xf32, #tpu.memory_space<vmem>>, vector<8x128xf32>,
    %512 = vector.extract_strided_slice %326 {offsets = [40, 0], sizes = [8, 64], strides = [1, 1]} : vector<64x64xf32> to vector<8x64xf32>
    %cst_152 = arith.constant dense<0.000000e+00> : vector<8x64xf32>
    %513 = tpu.matmul %502, %317, %cst_152 {dimension_numbers = #tpu.dot_dimension_numbers<[1], [0], [0], [1], [0, 0, 1, 1], [], []>} : vector<8x16xf32>, vector<16x64xf32>, vector<8x64xf32> -> vector<8x64xf32>
    %514 = arith.addf %512, %513 : vector<8x64xf32>
    %515 = vector.extract_strided_slice %514 {offsets = [0, 0], sizes = [8, 16], strides = [1, 1]} : vector<8x64xf32> to vector<8x16xf32>
    %516 = arith.negf %515 : vector<8x16xf32>
    %517 = math.exp %516 : vector<8x16xf32>
    %cst_153 = arith.constant 1.000000e+00 : f32
    %518 = vector.broadcast %cst_153 : f32 to vector<8x16xf32>
    %519 = arith.addf %518, %517 : vector<8x16xf32>
    %520 = arith.divf %518, %519 : vector<8x16xf32>
    %521 = vector.extract_strided_slice %514 {offsets = [0, 16], sizes = [8, 16], strides = [1, 1]} : vector<8x64xf32> to vector<8x16xf32>
    %522 = arith.negf %521 : vector<8x16xf32>
    %523 = math.exp %522 : vector<8x16xf32>
    %cst_154 = arith.constant 1.000000e+00 : f32
    %524 = vector.broadcast %cst_154 : f32 to vector<8x16xf32>
    %525 = arith.addf %524, %523 : vector<8x16xf32>
    %526 = arith.divf %524, %525 : vector<8x16xf32>
    %527 = vector.extract_strided_slice %514 {offsets = [0, 32], sizes = [8, 16], strides = [1, 1]} : vector<8x64xf32> to vector<8x16xf32>
    %528 = math.tanh %527 : vector<8x16xf32>
    %529 = vector.extract_strided_slice %514 {offsets = [0, 48], sizes = [8, 16], strides = [1, 1]} : vector<8x64xf32> to vector<8x16xf32>
    %530 = arith.negf %529 : vector<8x16xf32>
    %531 = math.exp %530 : vector<8x16xf32>
    %cst_155 = arith.constant 1.000000e+00 : f32
    %532 = vector.broadcast %cst_155 : f32 to vector<8x16xf32>
    %533 = arith.addf %532, %531 : vector<8x16xf32>
    %534 = arith.divf %532, %533 : vector<8x16xf32>
    %535 = arith.mulf %526, %500 : vector<8x16xf32>
    %536 = arith.mulf %520, %528 : vector<8x16xf32>
    %537 = arith.addf %535, %536 : vector<8x16xf32>
    %538 = math.tanh %537 : vector<8x16xf32>
    %539 = arith.mulf %534, %538 : vector<8x16xf32>
    %cst_156 = arith.constant dense<0.000000e+00> : vector<8x32xf32>
    %540 = tpu.matmul %539, %319, %cst_156 {dimension_numbers = #tpu.dot_dimension_numbers<[1], [0], [0], [1], [0, 0, 1, 1], [], []>} : vector<8x16xf32>, vector<16x32xf32>, vector<8x32xf32> -> vector<8x32xf32>
    %541 = vector.broadcast %320 : vector<1x32xf32> to vector<8x32xf32>
    %542 = arith.addf %540, %541 : vector<8x32xf32>
    %cst_157 = arith.constant 0.000000e+00 : f32
    %543 = vector.broadcast %cst_157 : f32 to vector<8x32xf32>
    %544 = arith.maximumf %542, %543 : vector<8x32xf32>
    %cst_158 = arith.constant dense<0.000000e+00> : vector<8x128xf32>
    %545 = tpu.matmul %544, %321, %cst_158 {dimension_numbers = #tpu.dot_dimension_numbers<[1], [0], [0], [1], [0, 0, 1, 1], [], []>} : vector<8x32xf32>, vector<32x128xf32>, vector<8x128xf32> -> vector<8x128xf32>
    %546 = vector.broadcast %322 : vector<1x128xf32> to vector<8x128xf32>
    %547 = arith.addf %545, %546 : vector<8x128xf32>
    %c40 = arith.constant 40 : index
    %c0_159 = arith.constant 0 : index
    %548 = vector.load %arg5[%c40, %c0_159] : memref<64x128xf32, #tpu.memory_space<vmem>>, vector<8x128xf32>
    tpu.vector_store %arg5[%c40, %c0_159], %547 {strides = array<i32>} : memref<64x128xf32, #tpu.memory_space<vmem>>, vector<8x128xf32>,
    %549 = vector.extract_strided_slice %326 {offsets = [48, 0], sizes = [8, 64], strides = [1, 1]} : vector<64x64xf32> to vector<8x64xf32>
    %cst_160 = arith.constant dense<0.000000e+00> : vector<8x64xf32>
    %550 = tpu.matmul %539, %317, %cst_160 {dimension_numbers = #tpu.dot_dimension_numbers<[1], [0], [0], [1], [0, 0, 1, 1], [], []>} : vector<8x16xf32>, vector<16x64xf32>, vector<8x64xf32> -> vector<8x64xf32>
    %551 = arith.addf %549, %550 : vector<8x64xf32>
    %552 = vector.extract_strided_slice %551 {offsets = [0, 0], sizes = [8, 16], strides = [1, 1]} : vector<8x64xf32> to vector<8x16xf32>
    %553 = arith.negf %552 : vector<8x16xf32>
    %554 = math.exp %553 : vector<8x16xf32>
    %cst_161 = arith.constant 1.000000e+00 : f32
    %555 = vector.broadcast %cst_161 : f32 to vector<8x16xf32>
    %556 = arith.addf %555, %554 : vector<8x16xf32>
    %557 = arith.divf %555, %556 : vector<8x16xf32>
    %558 = vector.extract_strided_slice %551 {offsets = [0, 16], sizes = [8, 16], strides = [1, 1]} : vector<8x64xf32> to vector<8x16xf32>
    %559 = arith.negf %558 : vector<8x16xf32>
    %560 = math.exp %559 : vector<8x16xf32>
    %cst_162 = arith.constant 1.000000e+00 : f32
    %561 = vector.broadcast %cst_162 : f32 to vector<8x16xf32>
    %562 = arith.addf %561, %560 : vector<8x16xf32>
    %563 = arith.divf %561, %562 : vector<8x16xf32>
    %564 = vector.extract_strided_slice %551 {offsets = [0, 32], sizes = [8, 16], strides = [1, 1]} : vector<8x64xf32> to vector<8x16xf32>
    %565 = math.tanh %564 : vector<8x16xf32>
    %566 = vector.extract_strided_slice %551 {offsets = [0, 48], sizes = [8, 16], strides = [1, 1]} : vector<8x64xf32> to vector<8x16xf32>
    %567 = arith.negf %566 : vector<8x16xf32>
    %568 = math.exp %567 : vector<8x16xf32>
    %cst_163 = arith.constant 1.000000e+00 : f32
    %569 = vector.broadcast %cst_163 : f32 to vector<8x16xf32>
    %570 = arith.addf %569, %568 : vector<8x16xf32>
    %571 = arith.divf %569, %570 : vector<8x16xf32>
    %572 = arith.mulf %563, %537 : vector<8x16xf32>
    %573 = arith.mulf %557, %565 : vector<8x16xf32>
    %574 = arith.addf %572, %573 : vector<8x16xf32>
    %575 = math.tanh %574 : vector<8x16xf32>
    %576 = arith.mulf %571, %575 : vector<8x16xf32>
    %cst_164 = arith.constant dense<0.000000e+00> : vector<8x32xf32>
    %577 = tpu.matmul %576, %319, %cst_164 {dimension_numbers = #tpu.dot_dimension_numbers<[1], [0], [0], [1], [0, 0, 1, 1], [], []>} : vector<8x16xf32>, vector<16x32xf32>, vector<8x32xf32> -> vector<8x32xf32>
    %578 = vector.broadcast %320 : vector<1x32xf32> to vector<8x32xf32>
    %579 = arith.addf %577, %578 : vector<8x32xf32>
    %cst_165 = arith.constant 0.000000e+00 : f32
    %580 = vector.broadcast %cst_165 : f32 to vector<8x32xf32>
    %581 = arith.maximumf %579, %580 : vector<8x32xf32>
    %cst_166 = arith.constant dense<0.000000e+00> : vector<8x128xf32>
    %582 = tpu.matmul %581, %321, %cst_166 {dimension_numbers = #tpu.dot_dimension_numbers<[1], [0], [0], [1], [0, 0, 1, 1], [], []>} : vector<8x32xf32>, vector<32x128xf32>, vector<8x128xf32> -> vector<8x128xf32>
    %583 = vector.broadcast %322 : vector<1x128xf32> to vector<8x128xf32>
    %584 = arith.addf %582, %583 : vector<8x128xf32>
    %c48_167 = arith.constant 48 : index
    %c0_168 = arith.constant 0 : index
    %585 = vector.load %arg5[%c48_167, %c0_168] : memref<64x128xf32, #tpu.memory_space<vmem>>, vector<8x128xf32>
    tpu.vector_store %arg5[%c48_167, %c0_168], %584 {strides = array<i32>} : memref<64x128xf32, #tpu.memory_space<vmem>>, vector<8x128xf32>,
    %586 = vector.extract_strided_slice %326 {offsets = [56, 0], sizes = [8, 64], strides = [1, 1]} : vector<64x64xf32> to vector<8x64xf32>
    %cst_169 = arith.constant dense<0.000000e+00> : vector<8x64xf32>
    %587 = tpu.matmul %576, %317, %cst_169 {dimension_numbers = #tpu.dot_dimension_numbers<[1], [0], [0], [1], [0, 0, 1, 1], [], []>} : vector<8x16xf32>, vector<16x64xf32>, vector<8x64xf32> -> vector<8x64xf32>
    %588 = arith.addf %586, %587 : vector<8x64xf32>
    %589 = vector.extract_strided_slice %588 {offsets = [0, 0], sizes = [8, 16], strides = [1, 1]} : vector<8x64xf32> to vector<8x16xf32>
    %590 = arith.negf %589 : vector<8x16xf32>
    %591 = math.exp %590 : vector<8x16xf32>
    %cst_170 = arith.constant 1.000000e+00 : f32
    %592 = vector.broadcast %cst_170 : f32 to vector<8x16xf32>
    %593 = arith.addf %592, %591 : vector<8x16xf32>
    %594 = arith.divf %592, %593 : vector<8x16xf32>
    %595 = vector.extract_strided_slice %588 {offsets = [0, 16], sizes = [8, 16], strides = [1, 1]} : vector<8x64xf32> to vector<8x16xf32>
    %596 = arith.negf %595 : vector<8x16xf32>
    %597 = math.exp %596 : vector<8x16xf32>
    %cst_171 = arith.constant 1.000000e+00 : f32
    %598 = vector.broadcast %cst_171 : f32 to vector<8x16xf32>
    %599 = arith.addf %598, %597 : vector<8x16xf32>
    %600 = arith.divf %598, %599 : vector<8x16xf32>
    %601 = vector.extract_strided_slice %588 {offsets = [0, 32], sizes = [8, 16], strides = [1, 1]} : vector<8x64xf32> to vector<8x16xf32>
    %602 = math.tanh %601 : vector<8x16xf32>
    %603 = vector.extract_strided_slice %588 {offsets = [0, 48], sizes = [8, 16], strides = [1, 1]} : vector<8x64xf32> to vector<8x16xf32>
    %604 = arith.negf %603 : vector<8x16xf32>
    %605 = math.exp %604 : vector<8x16xf32>
    %cst_172 = arith.constant 1.000000e+00 : f32
    %606 = vector.broadcast %cst_172 : f32 to vector<8x16xf32>
    %607 = arith.addf %606, %605 : vector<8x16xf32>
    %608 = arith.divf %606, %607 : vector<8x16xf32>
    %609 = arith.mulf %600, %574 : vector<8x16xf32>
    %610 = arith.mulf %594, %602 : vector<8x16xf32>
    %611 = arith.addf %609, %610 : vector<8x16xf32>
    %612 = math.tanh %611 : vector<8x16xf32>
    %613 = arith.mulf %608, %612 : vector<8x16xf32>
    %cst_173 = arith.constant dense<0.000000e+00> : vector<8x32xf32>
    %614 = tpu.matmul %613, %319, %cst_173 {dimension_numbers = #tpu.dot_dimension_numbers<[1], [0], [0], [1], [0, 0, 1, 1], [], []>} : vector<8x16xf32>, vector<16x32xf32>, vector<8x32xf32> -> vector<8x32xf32>
    %615 = vector.broadcast %320 : vector<1x32xf32> to vector<8x32xf32>
    %616 = arith.addf %614, %615 : vector<8x32xf32>
    %cst_174 = arith.constant 0.000000e+00 : f32
    %617 = vector.broadcast %cst_174 : f32 to vector<8x32xf32>
    %618 = arith.maximumf %616, %617 : vector<8x32xf32>
    %cst_175 = arith.constant dense<0.000000e+00> : vector<8x128xf32>
    %619 = tpu.matmul %618, %321, %cst_175 {dimension_numbers = #tpu.dot_dimension_numbers<[1], [0], [0], [1], [0, 0, 1, 1], [], []>} : vector<8x32xf32>, vector<32x128xf32>, vector<8x128xf32> -> vector<8x128xf32>
    %620 = vector.broadcast %322 : vector<1x128xf32> to vector<8x128xf32>
    %621 = arith.addf %619, %620 : vector<8x128xf32>
    %c56 = arith.constant 56 : index
    %c0_176 = arith.constant 0 : index
    %622 = vector.load %arg5[%c56, %c0_176] : memref<64x128xf32, #tpu.memory_space<vmem>>, vector<8x128xf32>
    tpu.vector_store %arg5[%c56, %c0_176], %621 {strides = array<i32>} : memref<64x128xf32, #tpu.memory_space<vmem>>, vector<8x128xf32>,
    return
  }
}

</mosaic_0001>

<bundles_post_ra>
// kernel: seq2seq_with_hp_forward.1
= control target key start
LH: loop header
LB: loop body
LE: loop exit
PB: predicated region body
PF: predicated region fallthrough
CT: control target
= control target key end

     0   :  { %vm33_vm0 = vcmask 64512   ;;  %v2092_v4 = vmov 0.0   ;;  %s2093_s28 = smov 96   ;;  %s2094_s29 = smov 16   ;;  %vm99_vm5 = vcmask 130048   ;;  %s2701_s2 = inlined_call_operand.vmem [shape: f32[184,64], index: 2, kind: input, shape index: {}]   ;;  %s2702_s0 = inlined_call_operand.vmem [shape: f32[64,8], index: 0, kind: input, shape index: {}]   ;;  %s2703_s3 = inlined_call_operand.vmem [shape: f32[168,128], index: 3, kind: input, shape index: {}]   ;;  %s2704_s4 = inlined_call_operand.vmem [shape: f32[192,32], index: 4, kind: input, shape index: {}]   ;;  %s2705_s1 = inlined_call_operand.vmem [shape: f32[64,128], index: 1, kind: input, shape index: {}]   ;;  %s2706_s5 = inlined_call_operand.vmem [shape: f32[64,128], index: 5, kind: output, shape index: {}]  }
   0x1   :  { %v20_v0 = vld [vmem:[%s2701_s2] sm:$0xff]  ;;  %v2135_v1 = vld [vmem:[%s2701_s2 + $0x10] sm:$0xff]  ;;  %v2144_v3 = vld [vmem:[%s2701_s2 + $0x8] sm:$0xff]  ;;  %s2095_s30 = smov 32   ;;  %s2096_s6 = smov 80  }
   0x2   :  { %v24_v2 = vld [vmem:[%s2702_s0] sm:$0xff]  ;;  %73 = vmatpush.msra.mxu0 %v20_v0  ;;  %117 = vmatpush.msra.mxu1 %v2135_v1  ;;  %v2155_v5 = vld [vmem:[%s2701_s2 + $0x18] ss:$0 sm:$0xff]  ;;  %v25_v32 = vld [vmem:[%s2702_s0 + $0x8] sm:$0xff]  ;;  %s2098_s27 = smov 112  }
   0x3   :  { %1887 = vmatmul.msk.f32.vlgmr.msra.gmra.mxu0 %vm33_vm0, %v24_v2  ;;  %184 = vmatpush.msra.mxu2 %v2135_v1  ;;  %v26_v60 = vld [vmem:[%s2702_s0 + $0x10] sm:$0xff] }
   0x4   :  { %118 = vmatpush.msra.mxu1 %v2144_v3 }
   0x5   :  { %119 = vmatmul.f32.vlgmr.msra.gmra.mxu1 %v2092_v4  ;;  %185 = vmatpush.msra.mxu2 %v2144_v3 }
   0x7   :  { %301 = vmatpush.msrb.mxu2 %v2135_v1 }
   0x9   :  { %302 = vmatpush.msrb.mxu2 %v2144_v3 }
   0xb   :  { %1888 = vmatmul.msk.f32.gmra.mxu0 %vm33_vm0, %v25_v32 }
  0x13   :  { %1889 = vmatmul.msk.f32.gmra.mxu0 %vm33_vm0, %v26_v60  ;;  %v348_v60 = vld [vmem:[%s2703_s3 + $0x28] sm:$0xff] }
  0x80   :  { %v75_v6 = vpop.f32.mrf.mxu0 }
  0x81   :  { %v76_v7 = vadd.f32 %v2155_v5, %v75_v6  ;;  %v2097_v6 = vmov -1.0  }
  0x82   :  { %v120_v8 = vpop.f32.mrf.mxu1 }
  0x83   :  { %v123_v9 = vadd.f32 %v120_v8, %v76_v7 }
  0x85   :  { %1964 = vtanh.f32 %v123_v9  ;;  %v1895_v11 = vmul.f32 -1.442695, %v123_v9 }
  0x87   :  { %1966 = vpow2.f32 %v1895_v11  ;;  %v164_v11 = vld [vmem:[%s2703_s3 + $0x8] sm:$0xff] }
  0x88   :  { %v78_v34 = vpop.f32.mrf.mxu0  ;;  %276 = vmatpush.msrb.mxu1 %v164_v11 }
  0x89   :  { %v79_v35 = vadd.f32 %v2155_v5, %v78_v34 }
  0x8b   :  { %v1965_v10 = vpop.eup %1964 }
  0x8c   :  { %146 = vrot.lane.b32.xlu0 %v1965_v10, %s2093_s28 }
  0x8d   :  { %v1967_v12 = vpop.eup %1966 }
  0x8e   :  { %v127_v13 = vadd.f32 1.0, %v1967_v12  ;;  %v163_v12 = vld [vmem:[%s2703_s3] sm:$0xff] }
  0x8f   :  { %277 = vmatpush.msrb.mxu1 %v163_v12 }
  0x90   :  { %1968 = vrcp.f32 %v127_v13  ;;  %v139_v19 = vand.u32 2147483648, %v127_v13  ;;  %vm133_vm2 = vweird.f32 %v127_v13  ;;  %v137_v20 = vand.u32 2147483647, %v127_v13  ;;  %v81_v62 = vpop.f32.mrf.mxu0 }
  0x91   :  { %v82_v63 = vadd.f32 %v2155_v5, %v81_v62  ;;  %394 = vmatpush.msra.mxu1 %v2135_v1 }
  0x92   :  { %v140_v22 = vor.u32 1.1754944e-38, %v139_v19  ;;  %vm138_vm4 = vcmp.eq.f32.partialorder %v137_v20, 8.507059e+37 }
  0x93   :  { %395 = vmatpush.msra.mxu1 %v2144_v3 }
  0x96   :  { %v1969_v14 = vpop.eup %1968 }
  0x97   :  { %v129_v15 = vmul.f32 %v1969_v14, %v127_v13  ;;  %vm134_vm1 = vweird.f32 %v1969_v14 }
  0x98   :  { %vm135_vm3 = vmor %vm133_vm2, %vm134_vm1 }
  0x99   :  { %v130_v16 = vsub.f32 1.0, %v129_v15 }
  0x9b   :  { %v131_v17 = vmul.f32 %v1969_v14, %v130_v16 }
  0x9d   :  { %v132_v18 = vadd.f32 %v1969_v14, %v131_v17 }
  0x9f   :  { %v136_v21 = vsel %vm135_vm3, %v1969_v14, %v132_v18 }
  0xa0   :  { %v141_v24 = vsel %vm138_vm4, %v140_v22, %v136_v21 }
  0xa1   :  { %v144_v26 = vmul.f32 0.0, %v141_v24 }
  0xfe   :  { %v147_v23 = vpop.permute.xlu0 %146 }
  0xff   :  { %v149_v25 = vmul.f32 %v147_v23, %v141_v24 }
 0x101   :  { %151 = vrot.lane.b32.xlu0 %v149_v25, %s2094_s29 }
 0x173   :  { %v152_v27 = vpop.permute.xlu0 %151 }
 0x174   :  { %v154_v28 = vadd.f32 %v152_v27, %v144_v26 }
 0x176   :  { %1970 = vtanh.f32 %v154_v28 }
 0x17c   :  { %v1971_v29 = vpop.eup %1970 }
 0x17d   :  { %157 = vrot.lane.b32.xlu1 %v1971_v29, %s2095_s30 }
 0x1ef   :  { %v158_v30 = vpop.permute.xlu1 %157 }
 0x1f0   :  { %v160_v31 = vmul.f32 %v158_v30, %v141_v24  ;;  %v27_v30 = vld [vmem:[%s2702_s0 + $0x18] sm:$0xff] }
 0x1f1   :  { %1890 = vmatmul.msk.f32.gmra.mxu0 %vm33_vm0, %v27_v30 }
 0x1f2   :  { %166 = vrot.lane.b32.xlu1 %v160_v31, %s2096_s6  ;;  %vm161_vm10 = vcmp.gt.f32.partialorder %v160_v31, 0.0 }
 0x1f3   :  { %v162_v7 = vsel %vm161_vm10, 1.0, %v2097_v6 }
 0x264   :  { %v167_v33 = vpop.permute.xlu1 %166 }
 0x265   :  { %1896 = vmatmul.msk.f32.vlgmr.msra.gmra.mxu2 %vm99_vm5, %v167_v33 }
 0x2e8   :  { %v187_v36 = vpop.f32.mrf.mxu2 }
 0x2e9   :  { %v190_v37 = vadd.f32 %v187_v36, %v79_v35  ;;  %v84_v35 = vpop.f32.mrf.mxu0 }
 0x2ea   :  { %v85_v36 = vadd.f32 %v2155_v5, %v84_v35 }
 0x2eb   :  { %1972 = vtanh.f32 %v190_v37  ;;  %v1897_v39 = vmul.f32 -1.442695, %v190_v37 }
 0x2ed   :  { %1974 = vpow2.f32 %v1897_v39 }
 0x2f1   :  { %v1973_v38 = vpop.eup %1972 }
 0x2f2   :  { %213 = vrot.lane.b32.xlu2 %v1973_v38, %s2093_s28 }
 0x2f3   :  { %v1975_v40 = vpop.eup %1974 }
 0x2f4   :  { %v194_v41 = vadd.f32 1.0, %v1975_v40 }
 0x2f6   :  { %1976 = vrcp.f32 %v194_v41  ;;  %v206_v47 = vand.u32 2147483648, %v194_v41  ;;  %vm200_vm7 = vweird.f32 %v194_v41  ;;  %v204_v48 = vand.u32 2147483647, %v194_v41 }
 0x2f8   :  { %v207_v50 = vor.u32 1.1754944e-38, %v206_v47  ;;  %vm205_vm9 = vcmp.eq.f32.partialorder %v204_v48, 8.507059e+37 }
 0x2fc   :  { %v1977_v42 = vpop.eup %1976 }
 0x2fd   :  { %v196_v43 = vmul.f32 %v1977_v42, %v194_v41  ;;  %vm201_vm6 = vweird.f32 %v1977_v42 }
 0x2fe   :  { %vm202_vm8 = vmor %vm200_vm7, %vm201_vm6 }
 0x2ff   :  { %v197_v44 = vsub.f32 1.0, %v196_v43 }
 0x301   :  { %v198_v45 = vmul.f32 %v1977_v42, %v197_v44  ;;  %v231_v44 = vld [vmem:[%s2703_s3 + $0x18] sm:$0xff] }
 0x302   :  { %251 = vmatpush.msra.mxu3 %v231_v44  ;;  %v29_v44 = vld [vmem:[%s2702_s0 + $0x28] sm:$0xff] }
 0x303   :  { %v199_v46 = vadd.f32 %v1977_v42, %v198_v45  ;;  %v230_v45 = vld [vmem:[%s2703_s3 + $0x10] sm:$0xff] }
 0x304   :  { %252 = vmatpush.msra.mxu3 %v230_v45 }
 0x305   :  { %v203_v49 = vsel %vm202_vm8, %v1977_v42, %v199_v46 }
 0x306   :  { %v208_v52 = vsel %vm205_vm9, %v207_v50, %v203_v49  ;;  %368 = vmatpush.msrb.mxu3 %v348_v60 }
 0x307   :  { %v211_v54 = vmul.f32 %v208_v52, %v154_v28 }
 0x34c   :  { %v214_v51 = vpop.permute.xlu2 %213 }
 0x34d   :  { %v216_v53 = vmul.f32 %v214_v51, %v208_v52 }
 0x34f   :  { %218 = vrot.lane.b32.xlu2 %v216_v53, %s2094_s29 }
 0x3a9   :  { %v219_v55 = vpop.permute.xlu2 %218 }
 0x3aa   :  { %v221_v56 = vadd.f32 %v219_v55, %v211_v54 }
 0x3ac   :  { %1978 = vtanh.f32 %v221_v56 }
 0x3b2   :  { %v1979_v57 = vpop.eup %1978 }
 0x3b3   :  { %224 = vrot.lane.b32.xlu0 %v1979_v57, %s2095_s30 }
 0x425   :  { %v225_v58 = vpop.permute.xlu0 %224 }
 0x426   :  { %v2171_v59 = vmul.f32 %v225_v58, %v208_v52 }
 0x428   :  { %283 = vrot.lane.b32.xlu1 %v2171_v59, %s2096_s6  ;;  %vm228_vm15 = vcmp.gt.f32.partialorder %v2171_v59, 0.0 }
 0x429   :  { %v229_v40 = vsel %vm228_vm15, 1.0, %v2097_v6 }
 0x49a   :  { %v284_v61 = vpop.permute.xlu1 %283 }
 0x49b   :  { %1900 = vmatmul.msk.f32.vlgmr.msrb.gmra.mxu2 %vm99_vm5, %v284_v61  ;;  %v347_v61 = vld [vmem:[%s2703_s3 + $0x20] sm:$0xff] }
 0x49c   :  { %369 = vmatpush.msrb.mxu3 %v347_v61 }
 0x51e   :  { %v304_v0 = vpop.f32.mrf.mxu2 }
 0x51f   :  { %v307_v2 = vadd.f32 %v304_v0, %v82_v63 }
 0x521   :  { %1980 = vtanh.f32 %v307_v2  ;;  %v1901_v8 = vmul.f32 -1.442695, %v307_v2 }
 0x523   :  { %1982 = vpow2.f32 %v1901_v8 }
 0x527   :  { %v1981_v4 = vpop.eup %1980 }
 0x528   :  { %330 = vrot.lane.b32.xlu2 %v1981_v4, %s2093_s28 }
 0x529   :  { %v1983_v9 = vpop.eup %1982 }
 0x52a   :  { %v311_v10 = vadd.f32 1.0, %v1983_v9  ;;  %v28_v9 = vld [vmem:[%s2702_s0 + $0x20] sm:$0xff] }
 0x52b   :  { %1891 = vmatmul.msk.f32.gmra.mxu0 %vm33_vm0, %v28_v9 }
 0x52c   :  { %1984 = vrcp.f32 %v311_v10  ;;  %v323_v18 = vand.u32 2147483648, %v311_v10  ;;  %vm317_vm12 = vweird.f32 %v311_v10  ;;  %v321_v19 = vand.u32 2147483647, %v311_v10 }
 0x52e   :  { %v324_v21 = vor.u32 1.1754944e-38, %v323_v18  ;;  %vm322_vm14 = vcmp.eq.f32.partialorder %v321_v19, 8.507059e+37 }
 0x530   :  { %258 = vrot.lane.b32.xlu2 %v162_v7, %s2096_s6 }
 0x532   :  { %v1985_v13 = vpop.eup %1984 }
 0x533   :  { %v313_v14 = vmul.f32 %v1985_v13, %v311_v10  ;;  %vm318_vm11 = vweird.f32 %v1985_v13  ;;  %1892 = vmatmul.msk.f32.gmra.mxu0 %vm33_vm0, %v29_v44 }
 0x534   :  { %vm319_vm13 = vmor %vm317_vm12, %vm318_vm11 }
 0x535   :  { %v314_v15 = vsub.f32 1.0, %v313_v14 }
 0x537   :  { %v315_v16 = vmul.f32 %v1985_v13, %v314_v15 }
 0x539   :  { %v316_v17 = vadd.f32 %v1985_v13, %v315_v16 }
 0x53b   :  { %v320_v20 = vsel %vm319_vm13, %v1985_v13, %v316_v17 }
 0x53c   :  { %v325_v23 = vsel %vm322_vm14, %v324_v21, %v320_v20 }
 0x53d   :  { %v328_v26 = vmul.f32 %v325_v23, %v221_v56 }
 0x582   :  { %v331_v22 = vpop.permute.xlu2 %330 }
 0x583   :  { %v333_v24 = vmul.f32 %v331_v22, %v325_v23  ;;  %v441_v22 = vld [vmem:[%s2703_s3 + $0x38] sm:$0xff] }
 0x584   :  { %461 = vmatpush.msra.mxu2 %v441_v22 }
 0x585   :  { %335 = vrot.lane.b32.xlu0 %v333_v24, %s2094_s29 }
 0x58a   :  { %v259_v25 = vpop.permute.xlu2 %258 }
 0x58b   :  { %1899 = vmatmul.msk.f32.vlgmr.msrb.gmra.mxu1 %vm99_vm5, %v259_v25 }
 0x5a8   :  { %v87_v13 = vpop.f32.mrf.mxu0 }
 0x5a9   :  { %v88_v14 = vadd.f32 %v2155_v5, %v87_v13 }
 0x5f7   :  { %v336_v27 = vpop.permute.xlu0 %335 }
 0x5f8   :  { %v338_v28 = vadd.f32 %v336_v27, %v328_v26 }
 0x5fa   :  { %1986 = vtanh.f32 %v338_v28 }
 0x600   :  { %v1987_v29 = vpop.eup %1986 }
 0x601   :  { %341 = vrot.lane.b32.xlu1 %v1987_v29, %s2095_s30 }
 0x608   :  { %v2201_v34 = vpop.f32.mrf.mxu1 }
 0x673   :  { %v342_v31 = vpop.permute.xlu1 %341 }
 0x674   :  { %v344_v32 = vmul.f32 %v342_v31, %v325_v23  ;;  %v440_v23 = vld [vmem:[%s2703_s3 + $0x30] sm:$0xff] }
 0x675   :  { %462 = vmatpush.msra.mxu2 %v440_v23 }
 0x676   :  { %376 = vrot.lane.b32.xlu0 %v344_v32, %s2096_s6  ;;  %vm345_vm6 = vcmp.gt.f32.partialorder %v344_v32, 0.0 }
 0x677   :  { %v346_v59 = vsel %vm345_vm6, 1.0, %v2097_v6  ;;  %580 = vmatpush.msrb.mxu2 %v2135_v1 }
 0x679   :  { %581 = vmatpush.msrb.mxu2 %v2144_v3 }
 0x6e8   :  { %v377_v33 = vpop.permute.xlu0 %376 }
 0x6e9   :  { %1903 = vmatmul.msk.f32.vlgmr.msra.gmra.mxu1 %vm99_vm5, %v377_v33 }
 0x766   :  { %v397_v37 = vpop.f32.mrf.mxu1 }
 0x767   :  { %v400_v38 = vadd.f32 %v397_v37, %v85_v36 }
 0x769   :  { %1988 = vtanh.f32 %v400_v38  ;;  %v1904_v41 = vmul.f32 -1.442695, %v400_v38 }
 0x76b   :  { %1990 = vpow2.f32 %v1904_v41 }
 0x76f   :  { %v1989_v39 = vpop.eup %1988 }
 0x770   :  { %423 = vrot.lane.b32.xlu1 %v1989_v39, %s2093_s28 }
 0x771   :  { %v1991_v42 = vpop.eup %1990 }
 0x772   :  { %v404_v43 = vadd.f32 1.0, %v1991_v42 }
 0x774   :  { %1992 = vrcp.f32 %v404_v43  ;;  %v416_v51 = vand.u32 2147483648, %v404_v43  ;;  %vm410_vm2 = vweird.f32 %v404_v43  ;;  %v414_v52 = vand.u32 2147483647, %v404_v43 }
 0x776   :  { %v417_v54 = vor.u32 1.1754944e-38, %v416_v51  ;;  %vm415_vm4 = vcmp.eq.f32.partialorder %v414_v52, 8.507059e+37 }
 0x778   :  { %233 = vrot.lane.b32.xlu1 %v229_v40, %s2096_s6 }
 0x77a   :  { %v1993_v46 = vpop.eup %1992 }
 0x77b   :  { %v406_v47 = vmul.f32 %v1993_v46, %v404_v43  ;;  %vm411_vm1 = vweird.f32 %v1993_v46 }
 0x77c   :  { %vm412_vm3 = vmor %vm410_vm2, %vm411_vm1 }
 0x77d   :  { %v407_v48 = vsub.f32 1.0, %v406_v47  ;;  %v90_v47 = vpop.f32.mrf.mxu0 }
 0x77f   :  { %v408_v49 = vmul.f32 %v1993_v46, %v407_v48  ;;  %v91_v48 = vadd.f32 %v2155_v5, %v90_v47 }
 0x781   :  { %v409_v50 = vadd.f32 %v1993_v46, %v408_v49 }
 0x783   :  { %v413_v53 = vsel %vm412_vm3, %v1993_v46, %v409_v50 }
 0x784   :  { %v418_v56 = vsel %vm415_vm4, %v417_v54, %v413_v53 }
 0x785   :  { %v421_v62 = vmul.f32 %v418_v56, %v338_v28 }
 0x7e2   :  { %v424_v55 = vpop.permute.xlu1 %423 }
 0x7e3   :  { %v426_v57 = vmul.f32 %v424_v55, %v418_v56 }
 0x7e5   :  { %428 = vrot.lane.b32.xlu2 %v426_v57, %s2094_s29  ;;  %v533_v57 = vld [vmem:[%s2703_s3 + $0x40] sm:$0xff] }
 0x7ea   :  { %v234_v58 = vpop.permute.xlu1 %233 }
 0x7eb   :  { %1898 = vmatmul.msk.f32.vlgmr.msra.gmra.mxu3 %vm99_vm5, %v234_v58 }
 0x7ec   :  { %487 = vmatpush.msra.mxu3 %v2135_v1 }
 0x7ed   :  { %350 = vrot.lane.b32.xlu2 %v346_v59, %s2096_s6 }
 0x7ee   :  { %488 = vmatpush.msra.mxu3 %v2144_v3 }
 0x83f   :  { %v429_v63 = vpop.permute.xlu2 %428 }
 0x840   :  { %v431_v0 = vadd.f32 %v429_v63, %v421_v62 }
 0x842   :  { %1994 = vtanh.f32 %v431_v0 }
 0x847   :  { %v351_v2 = vpop.permute.xlu2 %350 }
 0x848   :  { %v1995_v4 = vpop.eup %1994  ;;  %1902 = vmatmul.msk.f32.vlgmr.msrb.gmra.mxu3 %vm99_vm5, %v351_v2 }
 0x849   :  { %434 = vrot.lane.b32.xlu0 %v1995_v4, %s2095_s30 }
 0x86e   :  { %v2234_v11 = vpop.f32.mrf.mxu3 }
 0x8bb   :  { %v435_v7 = vpop.permute.xlu0 %434 }
 0x8bc   :  { %v437_v8 = vmul.f32 %v435_v7, %v418_v56  ;;  %v534_v56 = vld [vmem:[%s2703_s3 + $0x48] sm:$0xff] }
 0x8bd   :  { %554 = vmatpush.msrb.mxu1 %v534_v56 }
 0x8be   :  { %469 = vrot.lane.b32.xlu0 %v437_v8, %s2096_s6  ;;  %vm438_vm7 = vcmp.gt.f32.partialorder %v437_v8, 0.0 }
 0x8bf   :  { %v439_v18 = vsel %vm438_vm7, 1.0, %v2097_v6  ;;  %555 = vmatpush.msrb.mxu1 %v533_v57 }
 0x8c1   :  { %673 = vmatpush.msra.mxu1 %v2135_v1 }
 0x8c3   :  { %674 = vmatpush.msra.mxu1 %v2144_v3 }
 0x8cb   :  { %v2236_v12 = vpop.f32.mrf.mxu3 }
 0x930   :  { %v470_v10 = vpop.permute.xlu0 %469 }
 0x931   :  { %1906 = vmatmul.msk.f32.vlgmr.msra.gmra.mxu3 %vm99_vm5, %v470_v10 }
 0x9b4   :  { %v490_v15 = vpop.f32.mrf.mxu3 }
 0x9b5   :  { %v493_v16 = vadd.f32 %v490_v15, %v88_v14 }
 0x9b7   :  { %1996 = vtanh.f32 %v493_v16  ;;  %v1907_v19 = vmul.f32 -1.442695, %v493_v16 }
 0x9b9   :  { %1998 = vpow2.f32 %v1907_v19 }
 0x9bd   :  { %v1997_v17 = vpop.eup %1996 }
 0x9be   :  { %516 = vrot.lane.b32.xlu1 %v1997_v17, %s2093_s28  ;;  %v30_v17 = vld [vmem:[%s2702_s0 + $0x30] sm:$0xff] }
 0x9bf   :  { %v1999_v20 = vpop.eup %1998  ;;  %1893 = vmatmul.msk.f32.gmra.mxu0 %vm33_vm0, %v30_v17 }
 0x9c0   :  { %v497_v21 = vadd.f32 1.0, %v1999_v20 }
 0x9c2   :  { %2000 = vrcp.f32 %v497_v21  ;;  %v509_v29 = vand.u32 2147483648, %v497_v21  ;;  %vm503_vm9 = vweird.f32 %v497_v21  ;;  %v507_v30 = vand.u32 2147483647, %v497_v21 }
 0x9c4   :  { %v510_v32 = vor.u32 1.1754944e-38, %v509_v29  ;;  %vm508_vm11 = vcmp.eq.f32.partialorder %v507_v30, 8.507059e+37 }
 0x9c6   :  { %443 = vrot.lane.b32.xlu1 %v439_v18, %s2096_s6 }
 0x9c8   :  { %v2001_v24 = vpop.eup %2000 }
 0x9c9   :  { %v499_v25 = vmul.f32 %v2001_v24, %v497_v21  ;;  %vm504_vm8 = vweird.f32 %v2001_v24 }
 0x9ca   :  { %vm505_vm10 = vmor %vm503_vm9, %vm504_vm8 }
 0x9cb   :  { %v500_v26 = vsub.f32 1.0, %v499_v25 }
 0x9cd   :  { %v501_v27 = vmul.f32 %v2001_v24, %v500_v26 }
 0x9cf   :  { %v502_v28 = vadd.f32 %v2001_v24, %v501_v27 }
 0x9d1   :  { %v506_v31 = vsel %vm505_vm10, %v2001_v24, %v502_v28 }
 0x9d2   :  { %v511_v35 = vsel %vm508_vm11, %v510_v32, %v506_v31  ;;  %v627_v31 = vld [vmem:[%s2703_s3 + $0x58] sm:$0xff]  ;;  %v626_v32 = vld [vmem:[%s2703_s3 + $0x50] sm:$0xff] }
 0x9d3   :  { %v514_v38 = vmul.f32 %v511_v35, %v431_v0  ;;  %647 = vmatpush.msrb.mxu3 %v627_v31 }
 0x9d5   :  { %648 = vmatpush.msrb.mxu3 %v626_v32 }
 0x9d7   :  { %766 = vmatpush.msra.mxu3 %v2135_v1 }
 0x9d9   :  { %767 = vmatpush.msra.mxu3 %v2144_v3 }
 0xa30   :  { %v517_v33 = vpop.permute.xlu1 %516 }
 0xa31   :  { %v519_v36 = vmul.f32 %v517_v33, %v511_v35 }
 0xa33   :  { %521 = vrot.lane.b32.xlu2 %v519_v36, %s2094_s29 }
 0xa38   :  { %v444_v37 = vpop.permute.xlu1 %443 }
 0xa39   :  { %1905 = vmatmul.msk.f32.vlgmr.msra.gmra.mxu2 %vm99_vm5, %v444_v37 }
 0xa3c   :  { %v93_v22 = vpop.f32.mrf.mxu0 }
 0xa3d   :  { %v94_v23 = vadd.f32 %v2155_v5, %v93_v22 }
 0xa8d   :  { %v522_v39 = vpop.permute.xlu2 %521 }
 0xa8e   :  { %v524_v40 = vadd.f32 %v522_v39, %v514_v38 }
 0xa90   :  { %2002 = vtanh.f32 %v524_v40 }
 0xa96   :  { %v2003_v41 = vpop.eup %2002 }
 0xa97   :  { %527 = vrot.lane.b32.xlu0 %v2003_v41, %s2095_s30 }
 0xabc   :  { %v2259_v46 = vpop.f32.mrf.mxu2 }
 0xb09   :  { %v528_v42 = vpop.permute.xlu0 %527 }
 0xb0a   :  { %v530_v43 = vmul.f32 %v528_v42, %v511_v35 }
 0xb0c   :  { %562 = vrot.lane.b32.xlu2 %v530_v43, %s2096_s6  ;;  %vm531_vm12 = vcmp.gt.f32.partialorder %v530_v43, 0.0 }
 0xb0d   :  { %v532_v52 = vsel %vm531_vm12, 1.0, %v2097_v6 }
 0xb66   :  { %v563_v45 = vpop.permute.xlu2 %562 }
 0xb67   :  { %1909 = vmatmul.msk.f32.vlgmr.msrb.gmra.mxu2 %vm99_vm5, %v563_v45 }
 0xbea   :  { %v583_v49 = vpop.f32.mrf.mxu2 }
 0xbeb   :  { %v586_v50 = vadd.f32 %v583_v49, %v91_v48 }
 0xbed   :  { %2004 = vtanh.f32 %v586_v50  ;;  %v1910_v53 = vmul.f32 -1.442695, %v586_v50 }
 0xbef   :  { %2006 = vpow2.f32 %v1910_v53 }
 0xbf3   :  { %v2005_v51 = vpop.eup %2004 }
 0xbf4   :  { %609 = vrot.lane.b32.xlu0 %v2005_v51, %s2093_s28 }
 0xbf5   :  { %v2007_v54 = vpop.eup %2006 }
 0xbf6   :  { %v590_v55 = vadd.f32 1.0, %v2007_v54 }
 0xbf8   :  { %2008 = vrcp.f32 %v590_v55  ;;  %v602_v63 = vand.u32 2147483648, %v590_v55  ;;  %vm596_vm14 = vweird.f32 %v590_v55  ;;  %v600_v0 = vand.u32 2147483647, %v590_v55 }
 0xbfa   :  { %v603_v4 = vor.u32 1.1754944e-38, %v602_v63  ;;  %vm601_vm1 = vcmp.eq.f32.partialorder %v600_v0, 8.507059e+37  ;;  %v720_v0 = vld [vmem:[%s2703_s3 + $0x68] sm:$0xff] }
 0xbfb   :  { %740 = vmatpush.msra.mxu2 %v720_v0  ;;  %v946_v0 = vld [vmem:[%s2701_s2 + $0x70] sm:$0xff] }
 0xbfc   :  { %536 = vrot.lane.b32.xlu0 %v532_v52, %s2096_s6  ;;  %v31_v52 = vld [vmem:[%s2702_s0 + $0x38] sm:$0xff] }
 0xbfd   :  { %1894 = vmatmul.msk.f32.gmra.mxu0 %vm33_vm0, %v31_v52  ;;  %v896_v52 = vld [vmem:[%s2704_s4 + $0x20] sm:$0xff] }
 0xbfe   :  { %v2009_v58 = vpop.eup %2008 }
 0xbff   :  { %v592_v59 = vmul.f32 %v2009_v58, %v590_v55  ;;  %vm597_vm13 = vweird.f32 %v2009_v58 }
 0xc00   :  { %vm598_vm15 = vmor %vm596_vm14, %vm597_vm13 }
 0xc01   :  { %v593_v60 = vsub.f32 1.0, %v592_v59 }
 0xc03   :  { %v594_v61 = vmul.f32 %v2009_v58, %v593_v60 }
 0xc05   :  { %v595_v62 = vadd.f32 %v2009_v58, %v594_v61 }
 0xc07   :  { %v599_v2 = vsel %vm598_vm15, %v2009_v58, %v595_v62 }
 0xc08   :  { %v604_v8 = vsel %vm601_vm1, %v603_v4, %v599_v2 }
 0xc09   :  { %v607_v13 = vmul.f32 %v604_v8, %v524_v40 }
 0xc66   :  { %v610_v7 = vpop.permute.xlu0 %609 }
 0xc67   :  { %v612_v9 = vmul.f32 %v610_v7, %v604_v8 }
 0xc69   :  { %614 = vrot.lane.b32.xlu1 %v612_v9, %s2094_s29 }
 0xc6e   :  { %v537_v10 = vpop.permute.xlu0 %536 }
 0xc6f   :  { %1908 = vmatmul.msk.f32.vlgmr.msrb.gmra.mxu1 %vm99_vm5, %v537_v10 }
 0xc7a   :  { %v96_v55 = vpop.f32.mrf.mxu0 }
 0xc7b   :  { %v97_v56 = vadd.f32 %v2155_v5, %v96_v55  ;;  %v719_v5 = vld [vmem:[%s2703_s3 + $0x60] sm:$0xff] }
 0xc7c   :  { %741 = vmatpush.msra.mxu2 %v719_v5  ;;  %v945_v5 = vld [vmem:[%s2701_s2 + $0x68] sm:$0xff] }
 0xcdb   :  { %v615_v14 = vpop.permute.xlu1 %614 }
 0xcdc   :  { %v617_v15 = vadd.f32 %v615_v14, %v607_v13 }
 0xcde   :  { %2010 = vtanh.f32 %v617_v15 }
 0xce4   :  { %v2011_v16 = vpop.eup %2010 }
 0xce5   :  { %620 = vrot.lane.b32.xlu2 %v2011_v16, %s2095_s30 }
 0xcec   :  { %v2282_v21 = vpop.f32.mrf.mxu1 }
 0xd3f   :  { %v621_v18 = vpop.permute.xlu2 %620 }
 0xd40   :  { %v623_v19 = vmul.f32 %v621_v18, %v604_v8 }
 0xd42   :  { %655 = vrot.lane.b32.xlu1 %v623_v19, %s2096_s6  ;;  %vm624_vm2 = vcmp.gt.f32.partialorder %v623_v19, 0.0 }
 0xd43   :  { %v625_v27 = vsel %vm624_vm2, 1.0, %v2097_v6 }
 0xdb4   :  { %v656_v20 = vpop.permute.xlu1 %655 }
 0xdb5   :  { %1912 = vmatmul.msk.f32.vlgmr.msra.gmra.mxu1 %vm99_vm5, %v656_v20 }
 0xe32   :  { %v676_v24 = vpop.f32.mrf.mxu1 }
 0xe33   :  { %v679_v25 = vadd.f32 %v676_v24, %v94_v23 }
 0xe35   :  { %2012 = vtanh.f32 %v679_v25  ;;  %v1913_v28 = vmul.f32 -1.442695, %v679_v25  ;;  %v845_v25 = vld [vmem:[%s2704_s4 + $0x18] sm:$0xff] }
 0xe36   :  { %865 = vmatpush.msrb.mxu2 %v845_v25  ;;  %v2473_v25 = vld [vmem:[%s2701_s2 + $0xb0] ss:$0 sm:$0xff] }
 0xe37   :  { %2014 = vpow2.f32 %v1913_v28  ;;  %v812_v28 = vld [vmem:[%s2703_s3 + $0x70] sm:$0xff] }
 0xe3b   :  { %v2013_v26 = vpop.eup %2012 }
 0xe3c   :  { %702 = vrot.lane.b32.xlu2 %v2013_v26, %s2093_s28  ;;  %v844_v26 = vld [vmem:[%s2704_s4 + $0x10] sm:$0xff] }
 0xe3d   :  { %v2015_v29 = vpop.eup %2014  ;;  %866 = vmatpush.msrb.mxu2 %v844_v26 }
 0xe3e   :  { %v683_v30 = vadd.f32 1.0, %v2015_v29 }
 0xe40   :  { %2016 = vrcp.f32 %v683_v30  ;;  %v695_v39 = vand.u32 2147483648, %v683_v30  ;;  %vm689_vm4 = vweird.f32 %v683_v30  ;;  %v693_v40 = vand.u32 2147483647, %v683_v30 }
 0xe42   :  { %v696_v42 = vor.u32 1.1754944e-38, %v695_v39  ;;  %vm694_vm7 = vcmp.eq.f32.partialorder %v693_v40, 8.507059e+37  ;;  %v909_v39 = vld [vmem:[%s2704_s4 + $0x88] sm:$0xff]  ;;  %v908_v40 = vld [vmem:[%s2704_s4 + $0x80] sm:$0xff] }
 0xe44   :  { %629 = vrot.lane.b32.xlu2 %v625_v27, %s2096_s6  ;;  %v813_v27 = vld [vmem:[%s2703_s3 + $0x78] sm:$0xff] }
 0xe45   :  { %833 = vmatpush.msrb.mxu1 %v813_v27 }
 0xe46   :  { %v2017_v33 = vpop.eup %2016 }
 0xe47   :  { %v685_v35 = vmul.f32 %v2017_v33, %v683_v30  ;;  %vm690_vm3 = vweird.f32 %v2017_v33  ;;  %834 = vmatpush.msrb.mxu1 %v812_v28 }
 0xe48   :  { %vm691_vm6 = vmor %vm689_vm4, %vm690_vm3  ;;  %vm1102_vm3 = vcmask 261120  }
 0xe49   :  { %v686_v36 = vsub.f32 1.0, %v685_v35  ;;  %v842_v35 = vld [vmem:[%s2704_s4] sm:$0xff] }
 0xe4b   :  { %v687_v37 = vmul.f32 %v2017_v33, %v686_v36 }
 0xe4d   :  { %v688_v38 = vadd.f32 %v2017_v33, %v687_v37  ;;  %v911_v37 = vld [vmem:[%s2704_s4 + $0x98] sm:$0xff] }
 0xe4e   :  { %912 = vmatpush.msrb.mxu0 %v911_v37 }
 0xe4f   :  { %v692_v41 = vsel %vm691_vm6, %v2017_v33, %v688_v38  ;;  %v843_v33 = vld [vmem:[%s2704_s4 + $0x8] sm:$0xff]  ;;  %v910_v38 = vld [vmem:[%s2704_s4 + $0x90] sm:$0xff] }
 0xe50   :  { %v697_v44 = vsel %vm694_vm7, %v696_v42, %v692_v41  ;;  %913 = vmatpush.msrb.mxu0 %v910_v38  ;;  %v907_v41 = vld [vmem:[%s2704_s4 + $0x78] sm:$0xff]  ;;  %v906_v42 = vld [vmem:[%s2704_s4 + $0x70] sm:$0xff] }
 0xe51   :  { %v700_v3 = vmul.f32 %v697_v44, %v617_v15 }
 0xe52   :  { %914 = vmatpush.msrb.mxu0 %v909_v39 }
 0xe54   :  { %915 = vmatpush.msrb.mxu0 %v908_v40 }
 0xe56   :  { %916 = vmatpush.msrb.mxu0 %v907_v41 }
 0xe58   :  { %917 = vmatpush.msrb.mxu0 %v906_v42 }
 0xe96   :  { %v703_v43 = vpop.permute.xlu2 %702 }
 0xe97   :  { %v705_v45 = vmul.f32 %v703_v43, %v697_v44 }
 0xe99   :  { %707 = vrot.lane.b32.xlu0 %v705_v45, %s2094_s29  ;;  %v904_v45 = vld [vmem:[%s2704_s4 + $0x60] sm:$0xff] }
 0xe9e   :  { %v630_v1 = vpop.permute.xlu2 %629 }
 0xe9f   :  { %1911 = vmatmul.msk.f32.vlgmr.msrb.gmra.mxu3 %vm99_vm5, %v630_v1  ;;  %v903_v1 = vld [vmem:[%s2704_s4 + $0x58] sm:$0xff] }
 0xea0   :  { %890 = vmatpush.msrb.mxu3 %v843_v33 }
 0xea2   :  { %891 = vmatpush.msrb.mxu3 %v842_v35 }
 0xf0b   :  { %v708_v47 = vpop.permute.xlu0 %707 }
 0xf0c   :  { %v710_v48 = vadd.f32 %v708_v47, %v700_v3  ;;  %v902_v3 = vld [vmem:[%s2704_s4 + $0x50] sm:$0xff]  ;;  %v901_v47 = vld [vmem:[%s2704_s4 + $0x48] sm:$0xff] }
 0xf0e   :  { %2018 = vtanh.f32 %v710_v48 }
 0xf14   :  { %v2019_v49 = vpop.eup %2018 }
 0xf15   :  { %713 = vrot.lane.b32.xlu1 %v2019_v49, %s2095_s30  ;;  %v899_v49 = vld [vmem:[%s2704_s4 + $0x38] sm:$0xff] }
 0xf22   :  { %v2305_v54 = vpop.f32.mrf.mxu3 }
 0xf87   :  { %v714_v50 = vpop.permute.xlu1 %713 }
 0xf88   :  { %v716_v51 = vmul.f32 %v714_v50, %v697_v44  ;;  %v905_v44 = vld [vmem:[%s2704_s4 + $0x68] sm:$0xff]  ;;  %v898_v50 = vld [vmem:[%s2704_s4 + $0x30] sm:$0xff] }
 0xf89   :  { %918 = vmatpush.msrb.mxu0 %v905_v44 }
 0xf8a   :  { %748 = vrot.lane.b32.xlu0 %v716_v51, %s2096_s6  ;;  %vm717_vm8 = vcmp.gt.f32.partialorder %v716_v51, 0.0  ;;  %v897_v51 = vld [vmem:[%s2704_s4 + $0x28] sm:$0xff] }
 0xf8b   :  { %v718_v60 = vsel %vm717_vm8, 1.0, %v2097_v6  ;;  %919 = vmatpush.msrb.mxu0 %v904_v45 }
 0xf8d   :  { %920 = vmatpush.msrb.mxu0 %v903_v1 }
 0xf8f   :  { %921 = vmatpush.msrb.mxu0 %v902_v3 }
 0xf91   :  { %922 = vmatpush.msrb.mxu0 %v901_v47 }
 0xffc   :  { %v749_v53 = vpop.permute.xlu0 %748 }
 0xffd   :  { %1915 = vmatmul.msk.f32.vlgmr.msra.gmra.mxu3 %vm99_vm5, %v749_v53  ;;  %v280_v53 = vadd.f32 %v2201_v34, %v2234_v11  ;;  %v949_v34 = vld [vmem:[%s2701_s2 + $0x88] sm:$0xff] }
 0xfff   :  { %v374_v55 = vadd.f32 %v2236_v12, %v280_v53  ;;  %v2410_v12 = vld [vmem:[%s2701_s2 + $0xa8] sm:$0xff] }
0x1080   :  { %v769_v57 = vpop.f32.mrf.mxu3 }
0x1081   :  { %v772_v58 = vadd.f32 %v769_v57, %v97_v56  ;;  %v467_v56 = vadd.f32 %v2259_v46, %v374_v55  ;;  %v964_v55 = vld [vmem:[%s2705_s1 + $0x8] sm:$0xff] }
0x1083   :  { %2020 = vtanh.f32 %v772_v58  ;;  %v1916_v61 = vmul.f32 -1.442695, %v772_v58  ;;  %v560_v57 = vadd.f32 %v2282_v21, %v467_v56  ;;  %v948_v21 = vld [vmem:[%s2701_s2 + $0x80] sm:$0xff]  ;;  %v2503_v56 = vld [vmem:[%s2703_s3 + $0x98] sm:$0xff] }
0x1085   :  { %2022 = vpow2.f32 %v1916_v61  ;;  %v950_v61 = vld [vmem:[%s2701_s2 + $0x90] sm:$0xff] }
0x1089   :  { %v2021_v59 = vpop.eup %2020 }
0x108a   :  { %795 = vrot.lane.b32.xlu1 %v2021_v59, %s2093_s28  ;;  %v653_v59 = vadd.f32 %v2305_v54, %v560_v57  ;;  %v947_v54 = vld [vmem:[%s2701_s2 + $0x78] sm:$0xff] }
0x108b   :  { %v2023_v62 = vpop.eup %2022 }
0x108c   :  { %v776_v63 = vadd.f32 1.0, %v2023_v62 }
0x108e   :  { %2024 = vrcp.f32 %v776_v63  ;;  %v788_v10 = vand.u32 2147483648, %v776_v63  ;;  %vm782_vm9 = vweird.f32 %v776_v63  ;;  %v786_v13 = vand.u32 2147483647, %v776_v63 }
0x1090   :  { %v789_v15 = vor.u32 1.1754944e-38, %v788_v10  ;;  %vm787_vm11 = vcmp.eq.f32.partialorder %v786_v13, 8.507059e+37  ;;  %v2448_v10 = vld [vmem:[%s2701_s2 + $0xa0] sm:$0xff]  ;;  %v938_v13 = vld [vmem:[%s2701_s2 + $0x30] sm:$0xff] }
0x1092   :  { %722 = vrot.lane.b32.xlu1 %v718_v60, %s2096_s6  ;;  %v951_v60 = vld [vmem:[%s2701_s2 + $0x98] sm:$0xff] }
0x1093   :  { %972 = vmatpush.msra.mxu1 %v951_v60  ;;  %v2526_v60 = vld [vmem:[%s2703_s3 + $0x80] sm:$0xff] }
0x1094   :  { %v2025_v2 = vpop.eup %2024 }
0x1095   :  { %v778_v4 = vmul.f32 %v2025_v2, %v776_v63  ;;  %vm783_vm0 = vweird.f32 %v2025_v2  ;;  %973 = vmatpush.msra.mxu1 %v950_v61  ;;  %v2539_v61 = vld [vmem:[%s2704_s4 + $0xb8] ss:$0 sm:$0xff] }
0x1096   :  { %vm784_vm10 = vmor %vm782_vm9, %vm783_vm0 }
0x1097   :  { %v779_v7 = vsub.f32 1.0, %v778_v4  ;;  %974 = vmatpush.msra.mxu1 %v949_v34  ;;  %v942_v4 = vld [vmem:[%s2701_s2 + $0x50] sm:$0xff] }
0x1099   :  { %v780_v8 = vmul.f32 %v2025_v2, %v779_v7  ;;  %975 = vmatpush.msra.mxu1 %v948_v21  ;;  %v941_v7 = vld [vmem:[%s2701_s2 + $0x48] sm:$0xff] }
0x109b   :  { %v781_v9 = vadd.f32 %v2025_v2, %v780_v8  ;;  %976 = vmatpush.msra.mxu1 %v947_v54  ;;  %v940_v8 = vld [vmem:[%s2701_s2 + $0x40] sm:$0xff] }
0x109d   :  { %v785_v14 = vsel %vm784_vm10, %v2025_v2, %v781_v9  ;;  %977 = vmatpush.msra.mxu1 %v946_v0  ;;  %v944_v2 = vld [vmem:[%s2701_s2 + $0x60] sm:$0xff]  ;;  %v939_v9 = vld [vmem:[%s2701_s2 + $0x38] sm:$0xff] }
0x109e   :  { %v790_v17 = vsel %vm787_vm11, %v789_v15, %v785_v14  ;;  %v937_v14 = vld [vmem:[%s2701_s2 + $0x28] sm:$0xff]  ;;  %v936_v15 = vld [vmem:[%s2701_s2 + $0x20] sm:$0xff] }
0x109f   :  { %v793_v20 = vmul.f32 %v790_v17, %v710_v48  ;;  %v900_v48 = vld [vmem:[%s2704_s4 + $0x40] sm:$0xff]  ;;  %978 = vmatpush.msra.mxu1 %v945_v5 }
0x10a0   :  { %923 = vmatpush.msrb.mxu0 %v900_v48 }
0x10a1   :  { %979 = vmatpush.msra.mxu1 %v944_v2 }
0x10a2   :  { %924 = vmatpush.msrb.mxu0 %v899_v49 }
0x10a4   :  { %925 = vmatpush.msrb.mxu0 %v898_v50  ;;  %v2485_v50 = vld [vmem:[%s2704_s4 + $0xb0] sm:$0xff] }
0x10a5   :  { %1094 = vmatpush.msra.mxu3 %v2485_v50 }
0x10a6   :  { %926 = vmatpush.msrb.mxu0 %v897_v51  ;;  %v2490_v51 = vld [vmem:[%s2704_s4 + $0xa8] sm:$0xff] }
0x10a7   :  { %1095 = vmatpush.msra.mxu3 %v2490_v51 }
0x10a8   :  { %927 = vmatpush.msrb.mxu0 %v896_v52 }
0x10aa   :  { %1249 = vmatpush.msra.mxu0 %v2410_v12 }
0x10ac   :  { %1250 = vmatpush.msra.mxu0 %v2448_v10 }
0x10fc   :  { %v796_v16 = vpop.permute.xlu1 %795 }
0x10fd   :  { %v798_v18 = vmul.f32 %v796_v16, %v790_v17  ;;  %v963_v16 = vld [vmem:[%s2705_s1] sm:$0xff] }
0x10ff   :  { %800 = vrot.lane.b32.xlu2 %v798_v18, %s2094_s29 }
0x1104   :  { %v723_v19 = vpop.permute.xlu1 %722 }
0x1105   :  { %1914 = vmatmul.msk.f32.vlgmr.msra.gmra.mxu2 %vm99_vm5, %v723_v19 }
0x1106   :  { %1030 = vmatpush.msra.mxu2 %v2410_v12 }
0x1108   :  { %1031 = vmatpush.msra.mxu2 %v2448_v10 }
0x1159   :  { %v801_v22 = vpop.permute.xlu2 %800 }
0x115a   :  { %v803_v23 = vadd.f32 %v801_v22, %v793_v20  ;;  %v1960_v20 = vld [vmem:[%s2704_s4 + $0xa0] ss:$0 sm:$0xff] }
0x115c   :  { %2026 = vtanh.f32 %v803_v23 }
0x1162   :  { %v2027_v24 = vpop.eup %2026 }
0x1163   :  { %806 = vrot.lane.b32.xlu0 %v2027_v24, %s2095_s30 }
0x116b   :  { %847 = vrot.lane.b32.xlu0 %v803_v23, %s2098_s27 }
0x1188   :  { %v743_v58 = vpop.f32.mrf.mxu2 }
0x1189   :  { %v746_v62 = vadd.f32 %v743_v58, %v653_v59  ;;  %v2512_v58 = vld [vmem:[%s2703_s3 + $0x90] sm:$0xff]  ;;  %v2519_v59 = vld [vmem:[%s2703_s3 + $0x88] sm:$0xff] }
0x11d5   :  { %v807_v29 = vpop.permute.xlu0 %806 }
0x11d6   :  { %v809_v30 = vmul.f32 %v807_v29, %v790_v17 }
0x11d8   :  { %vm810_vm12 = vcmp.gt.f32.partialorder %v809_v30, 0.0  ;;  %872 = vrot.lane.b32.xlu1 %v809_v30, %s2096_s6 }
0x11d9   :  { %v811_v31 = vsel %vm810_vm12, 1.0, %v2097_v6 }
0x11da   :  { %815 = vrot.lane.b32.xlu2 %v811_v31, %s2096_s6 }
0x11dd   :  { %v848_v32 = vpop.permute.xlu0 %847 }
0x11de   :  { %1918 = vmatmul.msk.f32.vlgmr.msrb.gmra.mxu2 %vm99_vm5, %v848_v32 }
0x11df   :  { %1118 = vmatpush.msrb.mxu2 %v2503_v56 }
0x11e1   :  { %1119 = vmatpush.msrb.mxu2 %v2512_v58 }
0x11e3   :  { %1120 = vmatpush.msrb.mxu2 %v2519_v59 }
0x11e5   :  { %1121 = vmatpush.msrb.mxu2 %v2526_v60 }
0x1234   :  { %v816_v36 = vpop.permute.xlu2 %815 }
0x1235   :  { %1917 = vmatmul.msk.f32.vlgmr.msrb.gmra.mxu1 %vm99_vm5, %v816_v36 }
0x124a   :  { %v873_v43 = vpop.permute.xlu1 %872 }
0x124b   :  { %1919 = vmatmul.msk.f32.vlgmr.msrb.gmra.mxu3 %vm99_vm5, %v873_v43 }
0x124c   :  { %1141 = vmatpush.msrb.mxu3 %v2410_v12 }
0x124e   :  { %1142 = vmatpush.msrb.mxu3 %v2448_v10 }
0x1261   :  { %v868_v18 = vpop.f32.mrf.mxu2 }
0x12b2   :  { %v836_v11 = vpop.f32.mrf.mxu1 }
0x12b3   :  { %v839_v46 = vadd.f32 %v836_v11, %v746_v62 }
0x12b5   :  { %vm840_vm13 = vcmp.gt.f32.partialorder %v839_v46, 0.0 }
0x12b6   :  { %v841_v63 = vsel %vm840_vm13, 1.0, %v2097_v6  ;;  %v943_v6 = vld [vmem:[%s2701_s2 + $0x58] sm:$0xff] }
0x12b7   :  { %928 = vmatmul.f32.vlgmr.msrb.gmra.mxu0 %v841_v63  ;;  %980 = vmatpush.msra.mxu1 %v943_v6 }
0x12b8   :  { %1357 = vmatpush.msrb.mxu0 %v2410_v12 }
0x12b9   :  { %981 = vmatpush.msra.mxu1 %v942_v4 }
0x12ba   :  { %1358 = vmatpush.msrb.mxu0 %v2448_v10 }
0x12bb   :  { %982 = vmatpush.msra.mxu1 %v941_v7 }
0x12bd   :  { %983 = vmatpush.msra.mxu1 %v940_v8 }
0x12bf   :  { %984 = vmatpush.msra.mxu1 %v939_v9 }
0x12c1   :  { %985 = vmatpush.msra.mxu1 %v938_v13 }
0x12c3   :  { %986 = vmatpush.msra.mxu1 %v937_v14 }
0x12c5   :  { %987 = vmatpush.msra.mxu1 %v936_v15 }
0x12c6   :  { %988 = vmatmul.f32.vlgmr.msra.gmra.mxu1 %v963_v16 }
0x12ce   :  { %v893_v17 = vpop.f32.mrf.mxu3  ;;  %991 = vmatmul.f32.gmra.mxu1 %v964_v55 }
0x12cf   :  { %v894_v19 = vadd.f32 %v893_v17, %v868_v18 }
0x1334   :  { %v929_v22 = vpop.f32.mrf.mxu0 }
0x1335   :  { %v932_v23 = vadd.f32 %v929_v22, %v894_v19  ;;  %v2550_v22 = vld [vmem:[%s2703_s3 + $0xa0] ss:$0 sm:$0xff] }
0x1337   :  { %v935_v24 = vadd.f32 %v1960_v20, %v932_v23 }
0x1339   :  { %1920 = vmatmul.msk.f32.vlgmr.msra.gmra.mxu2 %vm99_vm5, %v935_v24 }
0x133a   :  { %1204 = vmatpush.msra.mxu2 %v2485_v50 }
0x133c   :  { %1205 = vmatpush.msra.mxu2 %v2490_v51 }
0x1343   :  { %v989_v26 = vpop.f32.mrf.mxu1 }
0x1344   :  { %v990_v27 = vadd.f32 %v2473_v25, %v989_v26 }
0x134b   :  { %v992_v11 = vpop.f32.mrf.mxu1 }
0x134c   :  { %v993_v21 = vadd.f32 %v2473_v25, %v992_v11 }
0x13bc   :  { %v1033_v28 = vpop.f32.mrf.mxu2 }
0x13bd   :  { %v1036_v29 = vadd.f32 %v1033_v28, %v990_v27 }
0x13bf   :  { %2028 = vtanh.f32 %v1036_v29  ;;  %v1921_v31 = vmul.f32 -1.442695, %v1036_v29 }
0x13c1   :  { %2030 = vpow2.f32 %v1921_v31 }
0x13c5   :  { %v2029_v30 = vpop.eup %2028 }
0x13c6   :  { %1059 = vrot.lane.b32.xlu2 %v2029_v30, %s2093_s28  ;;  %v965_v30 = vld [vmem:[%s2705_s1 + $0x10] sm:$0xff] }
0x13c7   :  { %v2031_v32 = vpop.eup %2030  ;;  %994 = vmatmul.f32.gmra.mxu1 %v965_v30 }
0x13c8   :  { %v1040_v33 = vadd.f32 1.0, %v2031_v32 }
0x13ca   :  { %2032 = vrcp.f32 %v1040_v33  ;;  %v1052_v40 = vand.u32 2147483648, %v1040_v33  ;;  %vm1046_vm15 = vweird.f32 %v1040_v33  ;;  %v1050_v41 = vand.u32 2147483647, %v1040_v33 }
0x13cc   :  { %v1053_v43 = vor.u32 1.1754944e-38, %v1052_v40  ;;  %vm1051_vm2 = vcmp.eq.f32.partialorder %v1050_v41, 8.507059e+37 }
0x13d0   :  { %v2033_v35 = vpop.eup %2032 }
0x13d1   :  { %v1042_v36 = vmul.f32 %v2033_v35, %v1040_v33  ;;  %vm1047_vm14 = vweird.f32 %v2033_v35 }
0x13d2   :  { %vm1048_vm1 = vmor %vm1046_vm15, %vm1047_vm14 }
0x13d3   :  { %v1043_v37 = vsub.f32 1.0, %v1042_v36 }
0x13d5   :  { %v1044_v38 = vmul.f32 %v2033_v35, %v1043_v37 }
0x13d7   :  { %v1045_v39 = vadd.f32 %v2033_v35, %v1044_v38 }
0x13d9   :  { %v1049_v42 = vsel %vm1048_vm1, %v2033_v35, %v1045_v39 }
0x13da   :  { %v1054_v45 = vsel %vm1051_vm2, %v1053_v43, %v1049_v42 }
0x13db   :  { %v1057_v3 = vmul.f32 %v1054_v45, %v935_v24 }
0x1420   :  { %v1060_v44 = vpop.permute.xlu2 %1059 }
0x1421   :  { %v1062_v1 = vmul.f32 %v1060_v44, %v1054_v45 }
0x1423   :  { %1064 = vrot.lane.b32.xlu0 %v1062_v1, %s2094_s29 }
0x1444   :  { %v995_v35 = vpop.f32.mrf.mxu1 }
0x1445   :  { %v996_v36 = vadd.f32 %v2473_v25, %v995_v35 }
0x1495   :  { %v1065_v47 = vpop.permute.xlu0 %1064 }
0x1496   :  { %v2478_v48 = vadd.f32 %v1065_v47, %v1057_v3 }
0x1498   :  { %2034 = vtanh.f32 %v2478_v48 }
0x149e   :  { %v2035_v49 = vpop.eup %2034 }
0x149f   :  { %1070 = vrot.lane.b32.xlu1 %v2035_v49, %s2095_s30 }
0x1511   :  { %v1071_v52 = vpop.permute.xlu1 %1070 }
0x1512   :  { %v1073_v53 = vmul.f32 %v1071_v52, %v1054_v45 }
0x1514   :  { %1076 = vrot.lane.b32.xlu2 %v1073_v53, %s2096_s6 }
0x156e   :  { %v1077_v57 = vpop.permute.xlu2 %1076 }
0x156f   :  { %1922 = vmatmul.msk.f32.vlgmr.msra.gmra.mxu3 %vm99_vm5, %v1077_v57 }
0x1570   :  { %1226 = vmatpush.msra.mxu3 %v2503_v56 }
0x1572   :  { %1227 = vmatpush.msra.mxu3 %v2512_v58 }
0x1574   :  { %1228 = vmatpush.msra.mxu3 %v2519_v59 }
0x1576   :  { %1229 = vmatpush.msra.mxu3 %v2526_v60 }
0x1577   :  { %1924 = vmatmul.msk.f32.vlgmr.msrb.gmra.mxu3 %vm99_vm5, %v1077_v57 }
0x1578   :  { %1334 = vmatpush.msrb.mxu3 %v2503_v56 }
0x157a   :  { %1335 = vmatpush.msrb.mxu3 %v2512_v58 }
0x157c   :  { %1336 = vmatpush.msrb.mxu3 %v2519_v59 }
0x157e   :  { %1337 = vmatpush.msrb.mxu3 %v2526_v60 }
0x15f2   :  { %v1097_v62 = vpop.f32.mrf.mxu3 }
0x15f3   :  { %v1098_v34 = vadd.f32 %v2539_v61, %v1097_v62 }
0x15f5   :  { %v1100_v46 = vmax.f32 %v1098_v34, 0.0 }
0x15f7   :  { %1923 = vmatmul.msk.f32.vlgmr.msrb.gmra.mxu2 %vm1102_vm3, %v1100_v46 }
0x15f8   :  { %1312 = vmatpush.msrb.mxu2 %v2485_v50 }
0x15fa   :  { %v1144_v54 = vpop.f32.mrf.mxu3  ;;  %1313 = vmatpush.msrb.mxu2 %v2490_v51 }
0x15fb   :  { %v1147_v63 = vadd.f32 %v1144_v54, %v993_v21 }
0x15fd   :  { %2036 = vtanh.f32 %v1147_v63  ;;  %v1925_v5 = vmul.f32 -1.442695, %v1147_v63 }
0x15ff   :  { %2038 = vpow2.f32 %v1925_v5 }
0x1603   :  { %v2037_v0 = vpop.eup %2036 }
0x1604   :  { %1170 = vrot.lane.b32.xlu0 %v2037_v0, %s2093_s28 }
0x1605   :  { %v2039_v2 = vpop.eup %2038 }
0x1606   :  { %v1151_v6 = vadd.f32 1.0, %v2039_v2  ;;  %v966_v2 = vld [vmem:[%s2705_s1 + $0x18] sm:$0xff] }
0x1607   :  { %997 = vmatmul.f32.gmra.mxu1 %v966_v2 }
0x1608   :  { %2040 = vrcp.f32 %v1151_v6  ;;  %v1163_v14 = vand.u32 2147483648, %v1151_v6  ;;  %vm1157_vm6 = vweird.f32 %v1151_v6  ;;  %v1161_v15 = vand.u32 2147483647, %v1151_v6 }
0x160a   :  { %v1164_v17 = vor.u32 1.1754944e-38, %v1163_v14  ;;  %vm1162_vm8 = vcmp.eq.f32.partialorder %v1161_v15, 8.507059e+37 }
0x160e   :  { %v2041_v4 = vpop.eup %2040 }
0x160f   :  { %v1153_v7 = vmul.f32 %v2041_v4, %v1151_v6  ;;  %vm1158_vm4 = vweird.f32 %v2041_v4 }
0x1610   :  { %vm1159_vm7 = vmor %vm1157_vm6, %vm1158_vm4 }
0x1611   :  { %v1154_v8 = vsub.f32 1.0, %v1153_v7 }
0x1613   :  { %v1155_v9 = vmul.f32 %v2041_v4, %v1154_v8 }
0x1615   :  { %v1156_v13 = vadd.f32 %v2041_v4, %v1155_v9 }
0x1617   :  { %v1160_v16 = vsel %vm1159_vm7, %v2041_v4, %v1156_v13 }
0x1618   :  { %v1165_v19 = vsel %vm1162_vm8, %v1164_v17, %v1160_v16 }
0x1619   :  { %v1168_v26 = vmul.f32 %v1165_v19, %v2478_v48 }
0x1676   :  { %v1171_v18 = vpop.permute.xlu0 %1170 }
0x1677   :  { %v1173_v20 = vmul.f32 %v1171_v18, %v1165_v19 }
0x1679   :  { %1175 = vrot.lane.b32.xlu1 %v1173_v20, %s2094_s29 }
0x167a   :  { %v1123_v23 = vpop.f32.mrf.mxu2 }
0x167b   :  { %v1124_v24 = vadd.f32 %v2550_v22, %v1123_v23 }
0x167d   :  { %1126 = vst [vmem:[%s2706_s5] sm:$0xff] %v1124_v24 }
0x1684   :  { %v998_v8 = vpop.f32.mrf.mxu1 }
0x1685   :  { %v999_v9 = vadd.f32 %v2473_v25, %v998_v8 }
0x16eb   :  { %v1176_v27 = vpop.permute.xlu1 %1175 }
0x16ec   :  { %v1178_v28 = vadd.f32 %v1176_v27, %v1168_v26 }
0x16ee   :  { %2042 = vtanh.f32 %v1178_v28 }
0x16f4   :  { %v2043_v29 = vpop.eup %2042 }
0x16f5   :  { %1181 = vrot.lane.b32.xlu2 %v2043_v29, %s2095_s30 }
0x174f   :  { %v1182_v31 = vpop.permute.xlu2 %1181 }
0x1750   :  { %v1184_v32 = vmul.f32 %v1182_v31, %v1165_v19 }
0x1752   :  { %1186 = vrot.lane.b32.xlu0 %v1184_v32, %s2096_s6 }
0x17c4   :  { %v1187_v33 = vpop.permute.xlu0 %1186 }
0x17c5   :  { %1926 = vmatmul.msk.f32.vlgmr.msra.gmra.mxu2 %vm99_vm5, %v1187_v33  ;;  %1928 = vmatmul.msk.f32.vlgmr.msra.gmra.mxu0 %vm99_vm5, %v1187_v33 }
0x17c6   :  { %1465 = vmatpush.msra.mxu0 %v2410_v12  ;;  %1420 = vmatpush.msra.mxu2 %v2485_v50 }
0x17c8   :  { %1466 = vmatpush.msra.mxu0 %v2448_v10  ;;  %1421 = vmatpush.msra.mxu2 %v2490_v51 }
0x1842   :  { %v1252_v37 = vpop.f32.mrf.mxu0 }
0x1843   :  { %v1255_v38 = vadd.f32 %v1252_v37, %v996_v36 }
0x1845   :  { %2044 = vtanh.f32 %v1255_v38  ;;  %v1929_v43 = vmul.f32 -1.442695, %v1255_v38 }
0x1847   :  { %2046 = vpow2.f32 %v1929_v43 }
0x1848   :  { %v1207_v39 = vpop.f32.mrf.mxu2 }
0x1849   :  { %v1208_v40 = vadd.f32 %v2539_v61, %v1207_v39 }
0x184b   :  { %v2045_v41 = vpop.eup %2044  ;;  %v1210_v42 = vmax.f32 %v1208_v40, 0.0 }
0x184c   :  { %1278 = vrot.lane.b32.xlu1 %v2045_v41, %s2093_s28 }
0x184d   :  { %1927 = vmatmul.msk.f32.vlgmr.msra.gmra.mxu3 %vm1102_vm3, %v1210_v42  ;;  %v2047_v44 = vpop.eup %2046 }
0x184e   :  { %1442 = vmatpush.msra.mxu3 %v2503_v56  ;;  %v1259_v45 = vadd.f32 1.0, %v2047_v44  ;;  %v967_v44 = vld [vmem:[%s2705_s1 + $0x20] sm:$0xff] }
0x184f   :  { %1000 = vmatmul.f32.gmra.mxu1 %v967_v44 }
0x1850   :  { %1443 = vmatpush.msra.mxu3 %v2512_v58  ;;  %2048 = vrcp.f32 %v1259_v45  ;;  %v1271_v52 = vand.u32 2147483648, %v1259_v45  ;;  %vm1265_vm9 = vweird.f32 %v1259_v45  ;;  %v1269_v53 = vand.u32 2147483647, %v1259_v45 }
0x1852   :  { %1444 = vmatpush.msra.mxu3 %v2519_v59  ;;  %v1272_v57 = vor.u32 1.1754944e-38, %v1271_v52  ;;  %vm1270_vm11 = vcmp.eq.f32.partialorder %v1269_v53, 8.507059e+37 }
0x1854   :  { %1445 = vmatpush.msra.mxu3 %v2526_v60 }
0x1856   :  { %v2049_v1 = vpop.eup %2048 }
0x1857   :  { %v1261_v3 = vmul.f32 %v2049_v1, %v1259_v45  ;;  %vm1266_vm0 = vweird.f32 %v2049_v1 }
0x1858   :  { %vm1267_vm10 = vmor %vm1265_vm9, %vm1266_vm0 }
0x1859   :  { %v1262_v47 = vsub.f32 1.0, %v1261_v3 }
0x185b   :  { %v1263_v48 = vmul.f32 %v2049_v1, %v1262_v47 }
0x185d   :  { %v1264_v49 = vadd.f32 %v2049_v1, %v1263_v48 }
0x185f   :  { %v1268_v55 = vsel %vm1267_vm10, %v2049_v1, %v1264_v49 }
0x1860   :  { %v1273_v34 = vsel %vm1270_vm11, %v1272_v57, %v1268_v55 }
0x1861   :  { %v1276_v54 = vmul.f32 %v1273_v34, %v1178_v28 }
0x18be   :  { %v1279_v62 = vpop.permute.xlu1 %1278 }
0x18bf   :  { %v1281_v11 = vmul.f32 %v1279_v62, %v1273_v34 }
0x18c1   :  { %1283 = vrot.lane.b32.xlu2 %v1281_v11, %s2094_s29 }
0x18cc   :  { %v1001_v47 = vpop.f32.mrf.mxu1 }
0x18cd   :  { %v1002_v48 = vadd.f32 %v2473_v25, %v1001_v47 }
0x18d0   :  { %v1231_v46 = vpop.f32.mrf.mxu3 }
0x18d1   :  { %v1232_v21 = vadd.f32 %v2550_v22, %v1231_v46 }
0x18d3   :  { %1234 = vst [vmem:[%s2706_s5 + $0x8] sm:$0xff] %v1232_v21 }
0x191b   :  { %v1284_v63 = vpop.permute.xlu2 %1283 }
0x191c   :  { %v1286_v0 = vadd.f32 %v1284_v63, %v1276_v54 }
0x191e   :  { %2050 = vtanh.f32 %v1286_v0 }
0x1924   :  { %v2051_v5 = vpop.eup %2050 }
0x1925   :  { %1289 = vrot.lane.b32.xlu0 %v2051_v5, %s2095_s30 }
0x1997   :  { %v1290_v6 = vpop.permute.xlu0 %1289 }
0x1998   :  { %v1292_v4 = vmul.f32 %v1290_v6, %v1273_v34 }
0x199a   :  { %1294 = vrot.lane.b32.xlu1 %v1292_v4, %s2096_s6 }
0x1a0c   :  { %v1295_v7 = vpop.permute.xlu1 %1294 }
0x1a0d   :  { %1930 = vmatmul.msk.f32.vlgmr.msrb.gmra.mxu2 %vm99_vm5, %v1295_v7  ;;  %1932 = vmatmul.msk.f32.vlgmr.msrb.gmra.mxu0 %vm99_vm5, %v1295_v7 }
0x1a0e   :  { %1573 = vmatpush.msrb.mxu0 %v2410_v12  ;;  %1528 = vmatpush.msrb.mxu2 %v2485_v50 }
0x1a10   :  { %1574 = vmatpush.msrb.mxu0 %v2448_v10  ;;  %1529 = vmatpush.msrb.mxu2 %v2490_v51 }
0x1a8a   :  { %v1360_v13 = vpop.f32.mrf.mxu0 }
0x1a8b   :  { %v1363_v14 = vadd.f32 %v1360_v13, %v999_v9 }
0x1a8d   :  { %2052 = vtanh.f32 %v1363_v14  ;;  %v1933_v19 = vmul.f32 -1.442695, %v1363_v14 }
0x1a8f   :  { %2054 = vpow2.f32 %v1933_v19 }
0x1a90   :  { %v1315_v15 = vpop.f32.mrf.mxu2 }
0x1a91   :  { %v1316_v16 = vadd.f32 %v2539_v61, %v1315_v15 }
0x1a93   :  { %v2053_v17 = vpop.eup %2052  ;;  %v1318_v18 = vmax.f32 %v1316_v16, 0.0 }
0x1a94   :  { %1386 = vrot.lane.b32.xlu2 %v2053_v17, %s2093_s28 }
0x1a95   :  { %1931 = vmatmul.msk.f32.vlgmr.msrb.gmra.mxu3 %vm1102_vm3, %v1318_v18  ;;  %v2055_v20 = vpop.eup %2054 }
0x1a96   :  { %1550 = vmatpush.msrb.mxu3 %v2503_v56  ;;  %v1367_v23 = vadd.f32 1.0, %v2055_v20  ;;  %v968_v20 = vld [vmem:[%s2705_s1 + $0x28] sm:$0xff] }
0x1a97   :  { %1003 = vmatmul.f32.gmra.mxu1 %v968_v20 }
0x1a98   :  { %1551 = vmatpush.msrb.mxu3 %v2512_v58  ;;  %2056 = vrcp.f32 %v1367_v23  ;;  %v1379_v30 = vand.u32 2147483648, %v1367_v23  ;;  %vm1373_vm13 = vweird.f32 %v1367_v23  ;;  %v1377_v31 = vand.u32 2147483647, %v1367_v23 }
0x1a9a   :  { %1552 = vmatpush.msrb.mxu3 %v2519_v59  ;;  %v1380_v33 = vor.u32 1.1754944e-38, %v1379_v30  ;;  %vm1378_vm15 = vcmp.eq.f32.partialorder %v1377_v31, 8.507059e+37 }
0x1a9c   :  { %1553 = vmatpush.msrb.mxu3 %v2526_v60 }
0x1a9e   :  { %v2057_v24 = vpop.eup %2056 }
0x1a9f   :  { %v1369_v26 = vmul.f32 %v2057_v24, %v1367_v23  ;;  %vm1374_vm12 = vweird.f32 %v2057_v24 }
0x1aa0   :  { %vm1375_vm14 = vmor %vm1373_vm13, %vm1374_vm12 }
0x1aa1   :  { %v1370_v27 = vsub.f32 1.0, %v1369_v26 }
0x1aa3   :  { %v1371_v28 = vmul.f32 %v2057_v24, %v1370_v27 }
0x1aa5   :  { %v1372_v29 = vadd.f32 %v2057_v24, %v1371_v28 }
0x1aa7   :  { %v1376_v32 = vsel %vm1375_vm14, %v2057_v24, %v1372_v29 }
0x1aa8   :  { %v1381_v36 = vsel %vm1378_vm15, %v1380_v33, %v1376_v32 }
0x1aa9   :  { %v1384_v40 = vmul.f32 %v1381_v36, %v1286_v0 }
0x1aee   :  { %v1387_v35 = vpop.permute.xlu2 %1386 }
0x1aef   :  { %v1389_v37 = vmul.f32 %v1387_v35, %v1381_v36 }
0x1af1   :  { %1391 = vrot.lane.b32.xlu0 %v1389_v37, %s2094_s29 }
0x1b14   :  { %v1004_v27 = vpop.f32.mrf.mxu1 }
0x1b15   :  { %v1005_v28 = vadd.f32 %v2473_v25, %v1004_v27 }
0x1b18   :  { %v1339_v38 = vpop.f32.mrf.mxu3 }
0x1b19   :  { %v1340_v39 = vadd.f32 %v2550_v22, %v1339_v38 }
0x1b1b   :  { %1342 = vst [vmem:[%s2706_s5 + $0x10] sm:$0xff] %v1340_v39 }
0x1b63   :  { %v1392_v41 = vpop.permute.xlu0 %1391 }
0x1b64   :  { %v1394_v42 = vadd.f32 %v1392_v41, %v1384_v40 }
0x1b66   :  { %2058 = vtanh.f32 %v1394_v42 }
0x1b6c   :  { %v2059_v43 = vpop.eup %2058 }
0x1b6d   :  { %1397 = vrot.lane.b32.xlu1 %v2059_v43, %s2095_s30 }
0x1bdf   :  { %v1398_v45 = vpop.permute.xlu1 %1397 }
0x1be0   :  { %v1400_v1 = vmul.f32 %v1398_v45, %v1381_v36 }
0x1be2   :  { %1402 = vrot.lane.b32.xlu2 %v1400_v1, %s2096_s6 }
0x1c3c   :  { %v1403_v3 = vpop.permute.xlu2 %1402 }
0x1c3d   :  { %1934 = vmatmul.msk.f32.vlgmr.msra.gmra.mxu2 %vm99_vm5, %v1403_v3  ;;  %1936 = vmatmul.msk.f32.vlgmr.msra.gmra.mxu0 %vm99_vm5, %v1403_v3 }
0x1c3e   :  { %1681 = vmatpush.msra.mxu0 %v2410_v12  ;;  %1636 = vmatpush.msra.mxu2 %v2485_v50 }
0x1c40   :  { %1682 = vmatpush.msra.mxu0 %v2448_v10  ;;  %1637 = vmatpush.msra.mxu2 %v2490_v51 }
0x1cba   :  { %v1468_v49 = vpop.f32.mrf.mxu0 }
0x1cbb   :  { %v1471_v52 = vadd.f32 %v1468_v49, %v1002_v48 }
0x1cbd   :  { %2060 = vtanh.f32 %v1471_v52  ;;  %v1937_v34 = vmul.f32 -1.442695, %v1471_v52 }
0x1cbf   :  { %2062 = vpow2.f32 %v1937_v34 }
0x1cc0   :  { %v1423_v53 = vpop.f32.mrf.mxu2 }
0x1cc1   :  { %v1424_v55 = vadd.f32 %v2539_v61, %v1423_v53 }
0x1cc3   :  { %v2061_v57 = vpop.eup %2060  ;;  %v1426_v62 = vmax.f32 %v1424_v55, 0.0 }
0x1cc4   :  { %1494 = vrot.lane.b32.xlu0 %v2061_v57, %s2093_s28 }
0x1cc5   :  { %1935 = vmatmul.msk.f32.vlgmr.msra.gmra.mxu3 %vm1102_vm3, %v1426_v62  ;;  %v2063_v11 = vpop.eup %2062  ;;  %v969_v62 = vld [vmem:[%s2705_s1 + $0x30] sm:$0xff] }
0x1cc6   :  { %1658 = vmatpush.msra.mxu3 %v2503_v56  ;;  %v1475_v46 = vadd.f32 1.0, %v2063_v11  ;;  %1006 = vmatmul.f32.gmra.mxu1 %v969_v62 }
0x1cc8   :  { %1659 = vmatpush.msra.mxu3 %v2512_v58  ;;  %2064 = vrcp.f32 %v1475_v46  ;;  %v1487_v2 = vand.u32 2147483648, %v1475_v46  ;;  %vm1481_vm2 = vweird.f32 %v1475_v46  ;;  %v1485_v6 = vand.u32 2147483647, %v1475_v46 }
0x1cca   :  { %1660 = vmatpush.msra.mxu3 %v2519_v59  ;;  %v1488_v7 = vor.u32 1.1754944e-38, %v1487_v2  ;;  %vm1486_vm6 = vcmp.eq.f32.partialorder %v1485_v6, 8.507059e+37 }
0x1ccc   :  { %1661 = vmatpush.msra.mxu3 %v2526_v60 }
0x1cce   :  { %v2065_v21 = vpop.eup %2064 }
0x1ccf   :  { %v1477_v54 = vmul.f32 %v2065_v21, %v1475_v46  ;;  %vm1482_vm1 = vweird.f32 %v2065_v21 }
0x1cd0   :  { %vm1483_vm4 = vmor %vm1481_vm2, %vm1482_vm1 }
0x1cd1   :  { %v1478_v63 = vsub.f32 1.0, %v1477_v54 }
0x1cd3   :  { %v1479_v0 = vmul.f32 %v2065_v21, %v1478_v63 }
0x1cd5   :  { %v1480_v5 = vadd.f32 %v2065_v21, %v1479_v0 }
0x1cd7   :  { %v1484_v4 = vsel %vm1483_vm4, %v2065_v21, %v1480_v5 }
0x1cd8   :  { %v1489_v9 = vsel %vm1486_vm6, %v1488_v7, %v1484_v4 }
0x1cd9   :  { %v1492_v16 = vmul.f32 %v1489_v9, %v1394_v42 }
0x1d36   :  { %v1495_v8 = vpop.permute.xlu0 %1494 }
0x1d37   :  { %v1497_v13 = vmul.f32 %v1495_v8, %v1489_v9 }
0x1d39   :  { %1499 = vrot.lane.b32.xlu1 %v1497_v13, %s2094_s29 }
0x1d43   :  { %v1007_v21 = vpop.f32.mrf.mxu1 }
0x1d44   :  { %v1008_v54 = vadd.f32 %v2473_v25, %v1007_v21 }
0x1d48   :  { %v1447_v14 = vpop.f32.mrf.mxu3 }
0x1d49   :  { %v1448_v15 = vadd.f32 %v2550_v22, %v1447_v14 }
0x1d4b   :  { %1450 = vst [vmem:[%s2706_s5 + $0x18] sm:$0xff] %v1448_v15 }
0x1dab   :  { %v1500_v17 = vpop.permute.xlu1 %1499 }
0x1dac   :  { %v1502_v18 = vadd.f32 %v1500_v17, %v1492_v16 }
0x1dae   :  { %2066 = vtanh.f32 %v1502_v18 }
0x1db4   :  { %v2067_v19 = vpop.eup %2066 }
0x1db5   :  { %1505 = vrot.lane.b32.xlu2 %v2067_v19, %s2095_s30 }
0x1e0f   :  { %v1506_v23 = vpop.permute.xlu2 %1505 }
0x1e10   :  { %v1508_v24 = vmul.f32 %v1506_v23, %v1489_v9 }
0x1e12   :  { %1510 = vrot.lane.b32.xlu0 %v1508_v24, %s2096_s6 }
0x1e84   :  { %v1511_v26 = vpop.permute.xlu0 %1510 }
0x1e85   :  { %1938 = vmatmul.msk.f32.vlgmr.msrb.gmra.mxu2 %vm99_vm5, %v1511_v26  ;;  %1940 = vmatmul.msk.f32.vlgmr.msrb.gmra.mxu0 %vm99_vm5, %v1511_v26 }
0x1e86   :  { %1789 = vmatpush.msrb.mxu0 %v2410_v12  ;;  %1744 = vmatpush.msrb.mxu2 %v2485_v50 }
0x1e88   :  { %1790 = vmatpush.msrb.mxu0 %v2448_v10  ;;  %1745 = vmatpush.msrb.mxu2 %v2490_v51 }
0x1f02   :  { %v1576_v29 = vpop.f32.mrf.mxu0 }
0x1f03   :  { %v1579_v30 = vadd.f32 %v1576_v29, %v1005_v28  ;;  %v970_v28 = vld [vmem:[%s2705_s1 + $0x38] sm:$0xff] }
0x1f04   :  { %1009 = vmatmul.f32.gmra.mxu1 %v970_v28 }
0x1f05   :  { %2068 = vtanh.f32 %v1579_v30  ;;  %v1941_v12 = vmul.f32 -1.442695, %v1579_v30 }
0x1f07   :  { %2070 = vpow2.f32 %v1941_v12 }
0x1f08   :  { %v1531_v31 = vpop.f32.mrf.mxu2 }
0x1f09   :  { %v1532_v32 = vadd.f32 %v2539_v61, %v1531_v31 }
0x1f0b   :  { %v2069_v33 = vpop.eup %2068  ;;  %v1534_v35 = vmax.f32 %v1532_v32, 0.0 }
0x1f0c   :  { %1602 = vrot.lane.b32.xlu1 %v2069_v33, %s2093_s28 }
0x1f0d   :  { %1939 = vmatmul.msk.f32.vlgmr.msrb.gmra.mxu3 %vm1102_vm3, %v1534_v35  ;;  %v2071_v10 = vpop.eup %2070 }
0x1f0e   :  { %1766 = vmatpush.msrb.mxu3 %v2503_v56  ;;  %v1583_v36 = vadd.f32 1.0, %v2071_v10 }
0x1f10   :  { %1767 = vmatpush.msrb.mxu3 %v2512_v58  ;;  %2072 = vrcp.f32 %v1583_v36  ;;  %v1595_v42 = vand.u32 2147483648, %v1583_v36  ;;  %vm1589_vm8 = vweird.f32 %v1583_v36  ;;  %v1593_v43 = vand.u32 2147483647, %v1583_v36 }
0x1f12   :  { %1768 = vmatpush.msrb.mxu3 %v2519_v59  ;;  %v1596_v45 = vor.u32 1.1754944e-38, %v1595_v42  ;;  %vm1594_vm9 = vcmp.eq.f32.partialorder %v1593_v43, 8.507059e+37 }
0x1f14   :  { %1769 = vmatpush.msrb.mxu3 %v2526_v60 }
0x1f16   :  { %v2073_v37 = vpop.eup %2072 }
0x1f17   :  { %v1585_v38 = vmul.f32 %v2073_v37, %v1583_v36  ;;  %vm1590_vm7 = vweird.f32 %v2073_v37 }
0x1f18   :  { %vm1591_vm0 = vmor %vm1589_vm8, %vm1590_vm7 }
0x1f19   :  { %v1586_v39 = vsub.f32 1.0, %v1585_v38 }
0x1f1b   :  { %v1587_v40 = vmul.f32 %v2073_v37, %v1586_v39 }
0x1f1d   :  { %v1588_v41 = vadd.f32 %v2073_v37, %v1587_v40 }
0x1f1f   :  { %v1592_v44 = vsel %vm1591_vm0, %v2073_v37, %v1588_v41 }
0x1f20   :  { %v1597_v3 = vsel %vm1594_vm9, %v1596_v45, %v1592_v44 }
0x1f21   :  { %v1600_v52 = vmul.f32 %v1597_v3, %v1502_v18 }
0x1f7e   :  { %v1603_v1 = vpop.permute.xlu1 %1602 }
0x1f7f   :  { %v1605_v47 = vmul.f32 %v1603_v1, %v1597_v3 }
0x1f81   :  { %1607 = vrot.lane.b32.xlu2 %v1605_v47, %s2094_s29  ;;  %v1010_v32 = vpop.f32.mrf.mxu1 }
0x1f82   :  { %v1011_v33 = vadd.f32 %v2473_v25, %v1010_v32 }
0x1f90   :  { %v1555_v48 = vpop.f32.mrf.mxu3 }
0x1f91   :  { %v1556_v49 = vadd.f32 %v2550_v22, %v1555_v48 }
0x1f93   :  { %1558 = vst [vmem:[%s2706_s5 + $0x20] sm:$0xff] %v1556_v49 }
0x1fdb   :  { %v1608_v53 = vpop.permute.xlu2 %1607 }
0x1fdc   :  { %v1610_v55 = vadd.f32 %v1608_v53, %v1600_v52 }
0x1fde   :  { %2074 = vtanh.f32 %v1610_v55 }
0x1fe4   :  { %v2075_v57 = vpop.eup %2074 }
0x1fe5   :  { %1613 = vrot.lane.b32.xlu0 %v2075_v57, %s2095_s30 }
0x2057   :  { %v1614_v34 = vpop.permute.xlu0 %1613 }
0x2058   :  { %v1616_v11 = vmul.f32 %v1614_v34, %v1597_v3 }
0x205a   :  { %1618 = vrot.lane.b32.xlu1 %v1616_v11, %s2096_s6 }
0x20cc   :  { %v1619_v46 = vpop.permute.xlu1 %1618 }
0x20cd   :  { %1942 = vmatmul.msk.f32.vlgmr.msra.gmra.mxu2 %vm99_vm5, %v1619_v46  ;;  %1944 = vmatmul.msk.f32.vlgmr.msra.gmra.mxu0 %vm99_vm5, %v1619_v46 }
0x20ce   :  { %1852 = vmatpush.msra.mxu2 %v2485_v50 }
0x20d0   :  { %1853 = vmatpush.msra.mxu2 %v2490_v51 }
0x214a   :  { %v1684_v63 = vpop.f32.mrf.mxu0 }
0x214b   :  { %v1687_v0 = vadd.f32 %v1684_v63, %v1008_v54 }
0x214d   :  { %2076 = vtanh.f32 %v1687_v0  ;;  %v1945_v50 = vmul.f32 -1.442695, %v1687_v0 }
0x214f   :  { %2078 = vpow2.f32 %v1945_v50 }
0x2150   :  { %v1639_v5 = vpop.f32.mrf.mxu2 }
0x2151   :  { %v1640_v2 = vadd.f32 %v2539_v61, %v1639_v5 }
0x2153   :  { %v2077_v6 = vpop.eup %2076  ;;  %v1642_v4 = vmax.f32 %v1640_v2, 0.0 }
0x2154   :  { %1710 = vrot.lane.b32.xlu2 %v2077_v6, %s2093_s28 }
0x2155   :  { %1943 = vmatmul.msk.f32.vlgmr.msra.gmra.mxu3 %vm1102_vm3, %v1642_v4  ;;  %v2079_v51 = vpop.eup %2078 }
0x2156   :  { %1874 = vmatpush.msra.mxu3 %v2503_v56  ;;  %v1691_v7 = vadd.f32 1.0, %v2079_v51 }
0x2158   :  { %1875 = vmatpush.msra.mxu3 %v2512_v58  ;;  %2080 = vrcp.f32 %v1691_v7  ;;  %v1703_v16 = vand.u32 2147483648, %v1691_v7  ;;  %vm1697_vm11 = vweird.f32 %v1691_v7  ;;  %v1701_v56 = vand.u32 2147483647, %v1691_v7 }
0x215a   :  { %1876 = vmatpush.msra.mxu3 %v2519_v59  ;;  %v1704_v17 = vor.u32 1.1754944e-38, %v1703_v16  ;;  %vm1702_vm13 = vcmp.eq.f32.partialorder %v1701_v56, 8.507059e+37 }
0x215c   :  { %1877 = vmatpush.msra.mxu3 %v2526_v60 }
0x215e   :  { %v2081_v8 = vpop.eup %2080 }
0x215f   :  { %v1693_v9 = vmul.f32 %v2081_v8, %v1691_v7  ;;  %vm1698_vm10 = vweird.f32 %v2081_v8 }
0x2160   :  { %vm1699_vm12 = vmor %vm1697_vm11, %vm1698_vm10 }
0x2161   :  { %v1694_v13 = vsub.f32 1.0, %v1693_v9 }
0x2163   :  { %v1695_v14 = vmul.f32 %v2081_v8, %v1694_v13 }
0x2165   :  { %v1696_v15 = vadd.f32 %v2081_v8, %v1695_v14 }
0x2167   :  { %v1700_v58 = vsel %vm1699_vm12, %v2081_v8, %v1696_v15 }
0x2168   :  { %v1705_v60 = vsel %vm1702_vm13, %v1704_v17, %v1700_v58 }
0x2169   :  { %v1708_v23 = vmul.f32 %v1705_v60, %v1610_v55 }
0x21ae   :  { %v1711_v59 = vpop.permute.xlu2 %1710 }
0x21af   :  { %v1713_v18 = vmul.f32 %v1711_v59, %v1705_v60 }
0x21b1   :  { %1715 = vrot.lane.b32.xlu0 %v1713_v18, %s2094_s29 }
0x21d8   :  { %v1663_v19 = vpop.f32.mrf.mxu3 }
0x21d9   :  { %v1664_v20 = vadd.f32 %v2550_v22, %v1663_v19 }
0x21db   :  { %1666 = vst [vmem:[%s2706_s5 + $0x28] sm:$0xff] %v1664_v20 }
0x2223   :  { %v1716_v24 = vpop.permute.xlu0 %1715 }
0x2224   :  { %v1718_v26 = vadd.f32 %v1716_v24, %v1708_v23 }
0x2226   :  { %2082 = vtanh.f32 %v1718_v26 }
0x222c   :  { %v2083_v27 = vpop.eup %2082 }
0x222d   :  { %1721 = vrot.lane.b32.xlu1 %v2083_v27, %s2095_s30 }
0x229f   :  { %v1722_v29 = vpop.permute.xlu1 %1721 }
0x22a0   :  { %v1724_v30 = vmul.f32 %v1722_v29, %v1705_v60 }
0x22a2   :  { %1726 = vrot.lane.b32.xlu2 %v1724_v30, %s2096_s6 }
0x22fc   :  { %v1727_v31 = vpop.permute.xlu2 %1726 }
0x22fd   :  { %1946 = vmatmul.msk.f32.vlgmr.msrb.gmra.mxu2 %vm99_vm5, %v1727_v31  ;;  %1948 = vmatmul.msk.f32.vlgmr.msrb.gmra.mxu0 %vm99_vm5, %v1727_v31 }
0x237a   :  { %v1792_v35 = vpop.f32.mrf.mxu0 }
0x237b   :  { %v1795_v12 = vadd.f32 %v1792_v35, %v1011_v33 }
0x237d   :  { %2084 = vtanh.f32 %v1795_v12  ;;  %v1949_v39 = vmul.f32 -1.442695, %v1795_v12 }
0x237f   :  { %2086 = vpow2.f32 %v1949_v39 }
0x2380   :  { %v1747_v10 = vpop.f32.mrf.mxu2 }
0x2381   :  { %v1748_v36 = vadd.f32 %v2539_v61, %v1747_v10 }
0x2383   :  { %v2085_v37 = vpop.eup %2084  ;;  %v1750_v38 = vmax.f32 %v1748_v36, 0.0 }
0x2384   :  { %1818 = vrot.lane.b32.xlu0 %v2085_v37, %s2093_s28 }
0x2385   :  { %1947 = vmatmul.msk.f32.vlgmr.msrb.gmra.mxu3 %vm1102_vm3, %v1750_v38  ;;  %v2087_v40 = vpop.eup %2086 }
0x2386   :  { %v1799_v41 = vadd.f32 1.0, %v2087_v40 }
0x2388   :  { %2088 = vrcp.f32 %v1799_v41  ;;  %v1811_v1 = vand.u32 2147483648, %v1799_v41  ;;  %vm1805_vm15 = vweird.f32 %v1799_v41  ;;  %v1809_v3 = vand.u32 2147483647, %v1799_v41 }
0x238a   :  { %v1812_v48 = vor.u32 1.1754944e-38, %v1811_v1  ;;  %vm1810_vm2 = vcmp.eq.f32.partialorder %v1809_v3, 8.507059e+37 }
0x238e   :  { %v2089_v42 = vpop.eup %2088 }
0x238f   :  { %v1801_v43 = vmul.f32 %v2089_v42, %v1799_v41  ;;  %vm1806_vm14 = vweird.f32 %v2089_v42 }
0x2390   :  { %vm1807_vm1 = vmor %vm1805_vm15, %vm1806_vm14 }
0x2391   :  { %v1802_v25 = vsub.f32 1.0, %v1801_v43 }
0x2393   :  { %v1803_v44 = vmul.f32 %v2089_v42, %v1802_v25 }
0x2395   :  { %v1804_v45 = vadd.f32 %v2089_v42, %v1803_v44 }
0x2397   :  { %v1808_v47 = vsel %vm1807_vm1, %v2089_v42, %v1804_v45 }
0x2398   :  { %v1813_v52 = vsel %vm1810_vm2, %v1812_v48, %v1808_v47 }
0x2399   :  { %v1816_v62 = vmul.f32 %v1813_v52, %v1718_v26 }
0x23f6   :  { %v1819_v49 = vpop.permute.xlu0 %1818 }
0x23f7   :  { %v1821_v53 = vmul.f32 %v1819_v49, %v1813_v52 }
0x23f9   :  { %1823 = vrot.lane.b32.xlu1 %v1821_v53, %s2094_s29 }
0x2408   :  { %v1771_v55 = vpop.f32.mrf.mxu3 }
0x2409   :  { %v1772_v57 = vadd.f32 %v2550_v22, %v1771_v55 }
0x240b   :  { %1774 = vst [vmem:[%s2706_s5 + $0x30] sm:$0xff] %v1772_v57 }
0x246b   :  { %v1824_v34 = vpop.permute.xlu1 %1823 }
0x246c   :  { %v1826_v11 = vadd.f32 %v1824_v34, %v1816_v62 }
0x246e   :  { %2090 = vtanh.f32 %v1826_v11 }
0x2474   :  { %v2091_v46 = vpop.eup %2090 }
0x2475   :  { %1829 = vrot.lane.b32.xlu2 %v2091_v46, %s2095_s30 }
0x24cf   :  { %v1830_v21 = vpop.permute.xlu2 %1829 }
0x24d0   :  { %v1832_v54 = vmul.f32 %v1830_v21, %v1813_v52 }
0x24d2   :  { %1834 = vrot.lane.b32.xlu0 %v1832_v54, %s2096_s6 }
0x2544   :  { %v1835_v63 = vpop.permute.xlu0 %1834 }
0x2545   :  { %1950 = vmatmul.msk.f32.vlgmr.msra.gmra.mxu2 %vm99_vm5, %v1835_v63 }
0x25c8   :  { %v1855_v0 = vpop.f32.mrf.mxu2 }
0x25c9   :  { %v1856_v5 = vadd.f32 %v2539_v61, %v1855_v0 }
0x25cb   :  { %v1858_v2 = vmax.f32 %v1856_v5, 0.0 }
0x25cd   :  { %1951 = vmatmul.msk.f32.vlgmr.msra.gmra.mxu3 %vm1102_vm3, %v1858_v2 }
0x2650   :  { %v1879_v6 = vpop.f32.mrf.mxu3 }
0x2651   :  { %v1880_v4 = vadd.f32 %v2550_v22, %v1879_v6 }
0x2653   :  { %1882 = vst [vmem:[%s2706_s5 + $0x38] sm:$0xff] %v1880_v4 }

</bundles_post_ra>
